<compile_context>
chip_gen: v6e
topology: v6e:2x2x1
jax: 0.10.0
libtpu: 0.0.40
codegen_flags: <defaults>
</compile_context>

<pallas_src>
import numpy as np

import jax
import jax.numpy as jnp
from jax import lax
from jax.experimental import pallas as pl
from jax.experimental.pallas import tpu as pltpu


MAX_M_TILE = 128   # MXU M rows per grid step.  128 fills a v5e MXU pass; bump
                   # to 256 on v6e/v7x once the kernel is actually MXU-bound.


def _round_up(n, m):
    return ((n + m - 1) // m) * m


# ----------------------------------------------------------------------------
# Pallas kernel: the whole encoder as 4 fused (matmul + bias + activation)
# stages; every intermediate activation stays on-chip.
# ----------------------------------------------------------------------------
def _encoder_kernel(x_ref, w1_ref, b1_ref, w2_ref, b2_ref, w3_ref, b3_ref,
                    w4_ref, b4_ref, s1_ref, s2_ref, s3_ref, o_ref):
    def dense(h, w_ref, b_ref):
        # Weight dtype decides the MXU input dtype (bf16 for the two big
        # layers, f32 for the tiny deep layers); f32 accumulate + epilogue.
        acc = jnp.dot(h.astype(w_ref.dtype), w_ref[...],
                      preferred_element_type=jnp.float32)
        return acc + b_ref[...]

    def leaky(v):
        # One VPU op instead of compare+select.
        return jnp.maximum(v, 0.2 * v)

    h1 = leaky(dense(x_ref[...], w1_ref, b1_ref))
    s1_ref[...] = h1                      # skip 1: (M, 8*8*8)  = 512 lanes
    h2 = leaky(dense(h1, w2_ref, b2_ref))
    s2_ref[...] = h2                      # skip 2: (M, 4*4*16) = 256 lanes
    h3 = leaky(dense(h2, w3_ref, b3_ref))
    s3_ref[...] = h3                      # skip 3: (M, 2*2*32) = 128 lanes
    o_ref[...] = jnp.tanh(dense(h3, w4_ref, b4_ref))     # code slab (M, 128)


def _fused_encoder_call(x_slab, ws, bs, out_widths, m_tile):
    m_pad, x_width = x_slab.shape
    grid_m = m_pad // m_tile

    operands = [x_slab]
    for w, b in zip(ws, bs):
        operands += [w, b]

    out_shape = tuple(jax.ShapeDtypeStruct((m_pad, f), jnp.float32)
                      for f in out_widths)

    # Advisory cost estimate so XLA overlaps the surrounding glue.
    flops = 2 * m_pad * sum(int(w.shape[0]) * int(w.shape[1]) for w in ws)
    bytes_accessed = (int(x_slab.size) * x_slab.dtype.itemsize
                      + sum(int(w.size) * w.dtype.itemsize for w in ws)
                      + sum(int(b.size) * b.dtype.itemsize for b in bs)
                      + sum(m_pad * f * 4 for f in out_widths))
    cost = pl.CostEstimate(flops=int(flops),
                           transcendentals=int(m_pad * out_widths[-1]),
                           bytes_accessed=int(bytes_accessed))

    # Explicit VMEM budget: weights (x2 buffers) + per-tile I/O (x2 buffers)
    # + live f32 intermediates + slack; capped well below v7x's 64 MiB.
    weight_bytes = (sum(int(w.size) * w.dtype.itemsize for w in ws)
                    + sum(int(b.size) * b.dtype.itemsize for b in bs))
    io_bytes = m_tile * (x_width * x_slab.dtype.itemsize
                         + sum(out_widths) * 4)
    vmem_limit = int(min(2 * (weight_bytes + io_bytes)
                         + m_tile * sum(out_widths) * 4
                         + (8 << 20),
                         48 << 20))

    if grid_m == 1:
        # Single M tile (e.g. B=2): no grid, no pipeline — everything is
        # single-buffered and VMEM-resident.
        vspec = pl.BlockSpec(memory_space=pltpu.MemorySpace.VMEM)
        return pl.pallas_call(
            _encoder_kernel,
            out_shape=out_shape,
            in_specs=[vspec] * len(operands),
            out_specs=tuple(vspec for _ in out_widths),
            compiler_params=pltpu.CompilerParams(vmem_limit_bytes=vmem_limit),
            cost_estimate=cost,
        )(*operands)

    # Batched path: tile the matmul M (sample) dimension.  Weights / biases
    # use a constant index_map -> DMA'd once, resident across grid steps; the
    # M axis is "parallel" so v7x splits it across its two TensorCores.
    in_specs = [pl.BlockSpec((m_tile, x_width), lambda i: (i, 0))]
    for w, b in zip(ws, bs):
        in_specs.append(pl.BlockSpec(w.shape, lambda i: (0, 0)))
        in_specs.append(pl.BlockSpec(b.shape, lambda i: (0, 0)))
    out_specs = tuple(pl.BlockSpec((m_tile, f), lambda i: (i, 0))
                      for f in out_widths)
    return pl.pallas_call(
        _encoder_kernel,
        out_shape=out_shape,
        grid=(grid_m,),
        in_specs=in_specs,
        out_specs=out_specs,
        compiler_params=pltpu.CompilerParams(
            dimension_semantics=("parallel",),
            vmem_limit_bytes=vmem_limit),
        cost_estimate=cost,
    )(*operands)


# ----------------------------------------------------------------------------
# Deterministic parameter init (synthetic, torch-layout weights).
# ----------------------------------------------------------------------------
def init_params(key, nc, nh, nf=8):
    layer_defs = [
        (nc, nf, 4, 2, 1),
        (nf, nf * 2, 4, 2, 1),
        (nf * 2, nf * 4, 4, 2, 1),
    ]
    keys = jax.random.split(key, len(layer_defs) + 1)
    conv_params = []
    for k, (cin, cout, ksz, s, p) in zip(keys[:-1], layer_defs):
        kw_, kb_ = jax.random.split(k)
        w = 0.1 * jax.random.normal(kw_, (cout, cin, ksz, ksz), jnp.float32)
        b = 0.01 * jax.random.normal(kb_, (cout,), jnp.float32)
        conv_params.append((w, b, s, p))
    cin_last = layer_defs[-1][1]
    kw_, kb_ = jax.random.split(keys[-1])
    w_last = 0.1 * jax.random.normal(kw_, (nh, cin_last, 2, 2), jnp.float32)
    b_last = 0.01 * jax.random.normal(kb_, (nh,), jnp.float32)
    return {"conv": conv_params, "last": (w_last, b_last, 1, 0)}


# ----------------------------------------------------------------------------
# Host-side (one-time) lowering of each Conv2d to a dense slab->slab matrix.
# Slabs are *unpadded interior* NHWC flats, lane-padded to a multiple of 128;
# zero padding is folded into the matrix by dropping out-of-range taps.
# ----------------------------------------------------------------------------
def build_slab_params(torch_params, h_in):
    # TODO(synk): for large spatial inputs (e.g. 64x64) the layer-1 matrix is
    # O((H*W*C)^2); switch layer 1 to in-kernel patch gathering (im2col via
    # pl.ds) against the real (k*k*cin, cout) weight.
    layers = list(torch_params["conv"]) + [torch_params["last"]]
    ws, bs, geom = [], [], []
    h = h_in
    for (w, b, s, p) in layers:
        cout, cin, k, _ = w.shape
        h_out = (h + 2 * p - k) // s + 1
        f_in = _round_up(h * h * cin, 128)
        f_out = _round_up(h_out * h_out * cout, 128)
        wnp = np.asarray(w, np.float32)
        bnp = np.asarray(b, np.float32)
        m = np.zeros((f_in, f_out), np.float32)
        bvec = np.zeros((f_out,), np.float32)
        for ho in range(h_out):
            for wo in range(h_out):
                ob = (ho * h_out + wo) * cout
                bvec[ob:ob + cout] = bnp
                for i in range(k):
                    hi = ho * s + i - p
                    if hi < 0 or hi >= h:
                        continue                      # zero-padding tap
                    for j in range(k):
                        wi = wo * s + j - p
                        if wi < 0 or wi >= h:
                            continue                  # zero-padding tap
                        ib = (hi * h + wi) * cin
                        m[ib:ib + cin, ob:ob + cout] += wnp[:, :, i, j].T
        # bf16 only where it buys real HBM/VMEM bytes (the big matrices); the
        # tiny deep layers stay f32 for closer parity with the f32 reference.
        dt = jnp.bfloat16 if m.size * 2 > (128 << 10) else jnp.float32
        ws.append(jnp.asarray(m, dt))
        bs.append(jnp.asarray(bvec[None, :], jnp.float32))
        geom.append(dict(h_in=h, cin=cin, h_out=h_out, cout=cout,
                         f_in=f_in, f_out=f_out))
        h = h_out
    return tuple(ws), tuple(bs), geom


# ----------------------------------------------------------------------------
# Boundary converters (single transpose/reshape at the edges only).
# ----------------------------------------------------------------------------
def _to_input_slab(x_nchw, g0, m_tile):
    B = x_nchw.shape[0]
    xh = jnp.transpose(x_nchw, (0, 2, 3, 1)).reshape(B, -1)     # NHWC flat
    lane_pad = g0["f_in"] - xh.shape[1]
    m_pad = _round_up(B, m_tile)
    slab = jnp.pad(xh, ((0, m_pad - B), (0, lane_pad)))
    return slab.astype(jnp.bfloat16)          # halve input DMA bytes


def _skip_from_slab(slab, g, B):
    h, c = g["h_out"], g["cout"]
    a = slab[:B, :h * h * c].reshape(B, h, h, c)
    # TODO(synk): let the decoder consume the NHWC slab directly and drop this
    # transpose; kept to match the torch NCHW skip layout for validation.
    return jnp.transpose(a, (0, 3, 1, 2))


# ----------------------------------------------------------------------------
# BaseEncoder.forward equivalent.
# ----------------------------------------------------------------------------
def make_encoder_forward(geom, nh):
    out_widths = tuple(g["f_out"] for g in geom)

    @jax.jit
    def fwd(x, ws, bs):
        # x: (B, T, C, H, W) -> (B, T*C, H, W)   [torch .view semantics]
        B = x.shape[0]
        x_nchw = x.reshape(B, -1, x.shape[3], x.shape[4])
        m_tile = min(MAX_M_TILE, _round_up(B, 8))
        slab = _to_input_slab(x_nchw, geom[0], m_tile)
        outs = _fused_encoder_call(slab, ws, bs, out_widths, m_tile)
        code = outs[-1][:B, :nh]
        skips = tuple(_skip_from_slab(s, g, B)
                      for s, g in zip(outs[:-1], geom[:-1]))
        return code, skips

    return fwd


def base_encoder_forward(fwd, x, ws, bs, return_skip=False):
    code, skips = fwd(x, ws, bs)
    if return_skip:
        return code, list(skips[::-1])    # deepest skip first, like the module
    return code


# ----------------------------------------------------------------------------
# Pure-JAX f32 reference for validation.
# ----------------------------------------------------------------------------
def _reference_forward(torch_params, x, nh):
    B = x.shape[0]
    h = x.reshape(B, -1, x.shape[3], x.shape[4])
    dn = ("NCHW", "OIHW", "NCHW")
    skips = []
    for (w, b, s, p) in torch_params["conv"]:
        h = lax.conv_general_dilated(h, w, (s, s), [(p, p), (p, p)],
                                     dimension_numbers=dn)
        h = h + b.reshape(1, -1, 1, 1)
        h = jnp.where(h >= 0.0, h, 0.2 * h)
        skips.append(h)
    w, b, s, p = torch_params["last"]
    h = lax.conv_general_dilated(h, w, (s, s), [(p, p), (p, p)],
                                 dimension_numbers=dn)
    h = jnp.tanh(h + b.reshape(1, -1, 1, 1))
    return h.reshape(-1, nh), skips[::-1]


if __name__ == "__main__":
    key = jax.random.PRNGKey(0)
    kx, kp, kb = jax.random.split(key, 3)

    B, T, C, H, W = 2, 2, 2, 16, 16
    nh, nf = 32, 8

    x = jax.random.normal(kx, (B, T, C, H, W), jnp.float32)
    torch_params = init_params(kp, nc=T * C, nh=nh, nf=nf)
    ws, bs, geom = build_slab_params(torch_params, h_in=H)

    fwd = make_encoder_forward(geom, nh)

    # ---- small-batch path (grid-less, single VMEM-resident invocation) ------
    code, skips = base_encoder_forward(fwd, x, ws, bs, return_skip=True)
    code = jax.block_until_ready(code)
    skips = [jax.block_until_ready(s) for s in skips]

    assert code.shape == (B, nh), code.shape
    assert skips[0].shape == (B, 4 * nf, 2, 2), skips[0].shape   # deepest first
    assert skips[-1].shape == (B, nf, 8, 8), skips[-1].shape
    assert bool(jnp.all(jnp.isfinite(code)))

    ref_code, ref_skips = _reference_forward(torch_params, x, nh)
    assert bool(jnp.allclose(code, ref_code, rtol=5e-2, atol=5e-2))
    for a, r in zip(skips, ref_skips):
        assert a.shape == r.shape, (a.shape, r.shape)
        assert bool(jnp.allclose(a, r, rtol=5e-2, atol=5e-2))

    # ---- batched path (M-tile grid, weights VMEM-resident across steps) -----
    Bb = 256                                   # two grid steps of M_TILE=128
    xb = jax.random.normal(kb, (Bb, T, C, H, W), jnp.float32)
    code_b, skips_b = base_encoder_forward(fwd, xb, ws, bs, return_skip=True)
    code_b = jax.block_until_ready(code_b)
    ref_code_b, ref_skips_b = _reference_forward(torch_params, xb, nh)
    assert code_b.shape == (Bb, nh), code_b.shape
    assert bool(jnp.allclose(code_b, ref_code_b, rtol=5e-2, atol=5e-2))
    assert bool(jnp.allclose(skips_b[0], ref_skips_b[0], rtol=5e-2, atol=5e-2))
    assert bool(jnp.allclose(skips_b[-1], ref_skips_b[-1], rtol=5e-2, atol=5e-2))

    print("KERNEL_OK")
</pallas_src>

<mosaic_0001>
module attributes {stable_mosaic.version = 11 : i64} {
  func.func @_encoder_kernel(%arg0: memref<8x1024xbf16, #tpu.memory_space<vmem>>, %arg1: memref<1024x512xbf16, #tpu.memory_space<vmem>>, %arg2: memref<1x512xf32, #tpu.memory_space<vmem>>, %arg3: memref<512x256xbf16, #tpu.memory_space<vmem>>, %arg4: memref<1x256xf32, #tpu.memory_space<vmem>>, %arg5: memref<256x128xf32, #tpu.memory_space<vmem>>, %arg6: memref<1x128xf32, #tpu.memory_space<vmem>>, %arg7: memref<128x128xf32, #tpu.memory_space<vmem>>, %arg8: memref<1x128xf32, #tpu.memory_space<vmem>>, %arg9: memref<8x512xf32, #tpu.memory_space<vmem>>, %arg10: memref<8x256xf32, #tpu.memory_space<vmem>>, %arg11: memref<8x128xf32, #tpu.memory_space<vmem>>, %arg12: memref<8x128xf32, #tpu.memory_space<vmem>>) attributes {dimension_semantics = [], scalar_prefetch = 0 : i64, scratch_operands = 0 : i64, tpu.core_type = #tpu.core_type<tc>} {
    %c0 = arith.constant 0 : index
    %c0_0 = arith.constant 0 : index
    %0 = vector.load %arg0[%c0, %c0_0] : memref<8x1024xbf16, #tpu.memory_space<vmem>>, vector<8x1024xbf16>
    %c0_1 = arith.constant 0 : index
    %c0_2 = arith.constant 0 : index
    %1 = vector.load %arg1[%c0_1, %c0_2] : memref<1024x512xbf16, #tpu.memory_space<vmem>>, vector<1024x512xbf16>
    %cst = arith.constant dense<0.000000e+00> : vector<8x512xf32>
    %2 = tpu.matmul %0, %1, %cst {dimension_numbers = #tpu.dot_dimension_numbers<[1], [0], [0], [1], [0, 0, 1, 1], [], []>} : vector<8x1024xbf16>, vector<1024x512xbf16>, vector<8x512xf32> -> vector<8x512xf32>
    %c0_3 = arith.constant 0 : index
    %c0_4 = arith.constant 0 : index
    %3 = vector.load %arg2[%c0_3, %c0_4] : memref<1x512xf32, #tpu.memory_space<vmem>>, vector<1x512xf32>
    %4 = vector.broadcast %3 : vector<1x512xf32> to vector<8x512xf32>
    %5 = arith.addf %2, %4 : vector<8x512xf32>
    %cst_5 = arith.constant 2.000000e-01 : f32
    %6 = vector.broadcast %cst_5 : f32 to vector<8x512xf32>
    %7 = arith.mulf %6, %5 : vector<8x512xf32>
    %8 = arith.maximumf %5, %7 : vector<8x512xf32>
    %c0_6 = arith.constant 0 : index
    %c0_7 = arith.constant 0 : index
    %9 = vector.load %arg9[%c0_6, %c0_7] : memref<8x512xf32, #tpu.memory_space<vmem>>, vector<8x512xf32>
    tpu.vector_store %arg9[%c0_6, %c0_7], %8 {strides = array<i32>} : memref<8x512xf32, #tpu.memory_space<vmem>>, vector<8x512xf32>,
    %10 = arith.truncf %8 : vector<8x512xf32> to vector<8x512xbf16>
    %c0_8 = arith.constant 0 : index
    %c0_9 = arith.constant 0 : index
    %11 = vector.load %arg3[%c0_8, %c0_9] : memref<512x256xbf16, #tpu.memory_space<vmem>>, vector<512x256xbf16>
    %cst_10 = arith.constant dense<0.000000e+00> : vector<8x256xf32>
    %12 = tpu.matmul %10, %11, %cst_10 {dimension_numbers = #tpu.dot_dimension_numbers<[1], [0], [0], [1], [0, 0, 1, 1], [], []>} : vector<8x512xbf16>, vector<512x256xbf16>, vector<8x256xf32> -> vector<8x256xf32>
    %c0_11 = arith.constant 0 : index
    %c0_12 = arith.constant 0 : index
    %13 = vector.load %arg4[%c0_11, %c0_12] : memref<1x256xf32, #tpu.memory_space<vmem>>, vector<1x256xf32>
    %14 = vector.broadcast %13 : vector<1x256xf32> to vector<8x256xf32>
    %15 = arith.addf %12, %14 : vector<8x256xf32>
    %cst_13 = arith.constant 2.000000e-01 : f32
    %16 = vector.broadcast %cst_13 : f32 to vector<8x256xf32>
    %17 = arith.mulf %16, %15 : vector<8x256xf32>
    %18 = arith.maximumf %15, %17 : vector<8x256xf32>
    %c0_14 = arith.constant 0 : index
    %c0_15 = arith.constant 0 : index
    %19 = vector.load %arg10[%c0_14, %c0_15] : memref<8x256xf32, #tpu.memory_space<vmem>>, vector<8x256xf32>
    tpu.vector_store %arg10[%c0_14, %c0_15], %18 {strides = array<i32>} : memref<8x256xf32, #tpu.memory_space<vmem>>, vector<8x256xf32>,
    %c0_16 = arith.constant 0 : index
    %c0_17 = arith.constant 0 : index
    %20 = vector.load %arg5[%c0_16, %c0_17] : memref<256x128xf32, #tpu.memory_space<vmem>>, vector<256x128xf32>
    %cst_18 = arith.constant dense<0.000000e+00> : vector<8x128xf32>
    %21 = tpu.matmul %18, %20, %cst_18 {dimension_numbers = #tpu.dot_dimension_numbers<[1], [0], [0], [1], [0, 0, 1, 1], [], []>} : vector<8x256xf32>, vector<256x128xf32>, vector<8x128xf32> -> vector<8x128xf32>
    %c0_19 = arith.constant 0 : index
    %c0_20 = arith.constant 0 : index
    %22 = vector.load %arg6[%c0_19, %c0_20] : memref<1x128xf32, #tpu.memory_space<vmem>>, vector<1x128xf32>
    %23 = vector.broadcast %22 : vector<1x128xf32> to vector<8x128xf32>
    %24 = arith.addf %21, %23 : vector<8x128xf32>
    %cst_21 = arith.constant 2.000000e-01 : f32
    %25 = vector.broadcast %cst_21 : f32 to vector<8x128xf32>
    %26 = arith.mulf %25, %24 : vector<8x128xf32>
    %27 = arith.maximumf %24, %26 : vector<8x128xf32>
    %c0_22 = arith.constant 0 : index
    %c0_23 = arith.constant 0 : index
    %28 = vector.load %arg11[%c0_22, %c0_23] : memref<8x128xf32, #tpu.memory_space<vmem>>, vector<8x128xf32>
    tpu.vector_store %arg11[%c0_22, %c0_23], %27 {strides = array<i32>} : memref<8x128xf32, #tpu.memory_space<vmem>>, vector<8x128xf32>,
    %c0_24 = arith.constant 0 : index
    %c0_25 = arith.constant 0 : index
    %29 = vector.load %arg7[%c0_24, %c0_25] : memref<128x128xf32, #tpu.memory_space<vmem>>, vector<128x128xf32>
    %cst_26 = arith.constant dense<0.000000e+00> : vector<8x128xf32>
    %30 = tpu.matmul %27, %29, %cst_26 {dimension_numbers = #tpu.dot_dimension_numbers<[1], [0], [0], [1], [0, 0, 1, 1], [], []>} : vector<8x128xf32>, vector<128x128xf32>, vector<8x128xf32> -> vector<8x128xf32>
    %c0_27 = arith.constant 0 : index
    %c0_28 = arith.constant 0 : index
    %31 = vector.load %arg8[%c0_27, %c0_28] : memref<1x128xf32, #tpu.memory_space<vmem>>, vector<1x128xf32>
    %32 = vector.broadcast %31 : vector<1x128xf32> to vector<8x128xf32>
    %33 = arith.addf %30, %32 : vector<8x128xf32>
    %34 = math.tanh %33 : vector<8x128xf32>
    %c0_29 = arith.constant 0 : index
    %c0_30 = arith.constant 0 : index
    %35 = vector.load %arg12[%c0_29, %c0_30] : memref<8x128xf32, #tpu.memory_space<vmem>>, vector<8x128xf32>
    tpu.vector_store %arg12[%c0_29, %c0_30], %34 {strides = array<i32>} : memref<8x128xf32, #tpu.memory_space<vmem>>, vector<8x128xf32>,
    return
  }
}

</mosaic_0001>

<bundles_post_ra>
// kernel: fwd.1
= control target key start
LH: loop header
LB: loop body
LE: loop exit
PB: predicated region body
PF: predicated region fallthrough
CT: control target
= control target key end

     0   :  { %18 = vsyncpa [#allocation3], 0  ;;  %s4174_s0 = inlined_call_operand.vmem [shape: bf16[8,1024], index: 0, kind: input, shape index: {}]   ;;  %s4175_s1 = inlined_call_operand.hbm [shape: bf16[1024,512], index: 1, kind: input, shape index: {}]   ;;  %s4176_s2 = inlined_call_operand.vmem [shape: f32[1,512], index: 2, kind: input, shape index: {}]   ;;  %s4177_s3 = inlined_call_operand.vmem [shape: bf16[512,256], index: 3, kind: input, shape index: {}]   ;;  %s4178_s4 = inlined_call_operand.vmem [shape: f32[1,256], index: 4, kind: input, shape index: {}]   ;;  %s4179_s5 = inlined_call_operand.vmem [shape: f32[256,128], index: 5, kind: input, shape index: {}]   ;;  %s4180_s6 = inlined_call_operand.vmem [shape: f32[1,128], index: 6, kind: input, shape index: {}]   ;;  %s4181_s7 = inlined_call_operand.hbm [shape: f32[128,128], index: 7, kind: input, shape index: {}]   ;;  %s4182_s8 = inlined_call_operand.vmem [shape: f32[1,128], index: 8, kind: input, shape index: {}]   ;;  %s4183_s9 = inlined_call_operand.vmem [shape: f32[8,512], index: 9, kind: output, shape index: {0}]   ;;  %s4184_s10 = inlined_call_operand.vmem [shape: f32[8,256], index: 10, kind: output, shape index: {1}]   ;;  %s4185_s11 = inlined_call_operand.vmem [shape: f32[8,128], index: 11, kind: output, shape index: {2}]   ;;  %s4186_s12 = inlined_call_operand.vmem [shape: f32[8,128], index: 12, kind: output, shape index: {3}]  }
   0x1   :  { %19 = vsyncpa [#allocation5], 0  ;;  %s3666_s21 = smov [#allocation2]  }
   0x2   :  { %s27_s22 = sshll.u32 %s3666_s21, 4  ;;  %s28_s22 = int_to_ptr.vmem [resolvable:$true] %s27_s22 }
   0x3   :  { %s3630_s23 = scalar_lea.vmem %s28_s22, 32768  ;;  %p3635_p1 = scmp.lt.s32.totalorder %s28_s22, %s28_s22 }
   0x4   :  { %p3631_p0 = scmp.ne.s32.totalorder %s28_s22, %s3630_s23  ;;  %p3636_p2 = scmp.lt.s32.totalorder %s3630_s23, %s3630_s23 }
   0x6   :  { %p3637_p3 = por %p3636_p2, %p3635_p1 }
   0x8   :  { %p3638_p4 = pnand %p3637_p3, %p3631_p0 }
   0xa   :  { %3641 = shalt.err (!%p3638_p4)
}
   0xb   :  { %s3667_s24 = smov 256   ;;  %s3668_s25 = smov 16  }
   0xc   :  { %33 = dma.hbm_to_vmem [thread:$0]  %s4175_s1, 32768, %s28_s22, [#allocation3], %s3667_s24, %s3667_s24, %s3668_s25  }
   0xd   :  { %s3669_s28 = smov [#allocation4]  }
   0xe   :  { %s49_s29 = sshll.u32 %s3669_s28, 4  ;;  %s50_s29 = int_to_ptr.vmem [resolvable:$true] %s49_s29 }
   0xf   :  { %s3650_s30 = scalar_lea.vmem %s50_s29, 2048  ;;  %p3655_p6 = scmp.lt.s32.totalorder %s50_s29, %s50_s29 }
  0x10   :  { %p3651_p5 = scmp.ne.s32.totalorder %s50_s29, %s3650_s30  ;;  %p3656_p7 = scmp.lt.s32.totalorder %s3650_s30, %s3650_s30 }
  0x12   :  { %p3657_p8 = por %p3656_p7, %p3655_p6 }
  0x14   :  { %p3658_p9 = pnand %p3657_p8, %p3651_p5 }
  0x16   :  { %3661 = shalt.err (!%p3658_p9)
}
  0x17   :  { %s3670_s13 = smov 128   ;;  %s3671_s14 = smov 8  }
  0x18   :  { %55 = dma.hbm_to_vmem [thread:$0]  %s4181_s7, 2048, %s50_s29, [#allocation5], %s3670_s13, %s3670_s13, %s3671_s14  }
  0x19   :  { %3662 = dma.done.wait [#allocation3], 32768  }
  0x1a   :  { %3663 = vsyncadd [#allocation3], 4294934528 }
  0x1b   :  { %3664 = dma.done.wait [#allocation5], 2048  }
  0x1c   :  { %3665 = vsyncadd [#allocation5], 4294965248  ;;  %v3132_v0 = vld [vmem:[#allocation2 + $0xe4] ss:$16 sps:$4 sm:$0xff]   ;;  %v3136_v2 = vld [vmem:[#allocation2 + $0xe0] ss:$16 sps:$4 sm:$0xff]  }
  0x1d   :  { %v3134_v1 = vld [vmem:[#allocation2 + $0x2e4] ss:$16 sps:$4 sm:$0xff]   ;;  %1654 = vmatprep.subr.bf16.mxu0 %v3132_v0  ;;  %v3137_v3 = vld [vmem:[#allocation2 + $0x2e0] ss:$16 sps:$4 sm:$0xff]   ;;  %v65_v48 = vld [vmem:[%s4174_s0 + $0x8] sm:$0xff]  ;;  %vm3673_vm0 = vmmov 0  }
  0x1e   :  { %1695 = vmatprep.subr.bf16.mxu1 %v3134_v1  ;;  %v3138_v4 = vld [vmem:[#allocation2 + $0xc4] ss:$16 sps:$4 sm:$0xff]   ;;  %1655 = vmatpush1.bf16.msra.mxu0 %v3136_v2  ;;  %v3142_v6 = vld [vmem:[#allocation2 + $0xc0] ss:$16 sps:$4 sm:$0xff]   ;;  %v3753_v51 = vcombine.high %v65_v48, %v65_v48 }
  0x1f   :  { %1696 = vmatpush1.bf16.msra.mxu1 %v3137_v3  ;;  %v3140_v5 = vld [vmem:[#allocation2 + $0x2c4] ss:$16 sps:$4 sm:$0xff]   ;;  %1656 = vmatprep.subr.bf16.mxu0 %v3138_v4  ;;  %v3143_v7 = vld [vmem:[#allocation2 + $0x2c0] ss:$16 sps:$4 sm:$0xff]  }
  0x20   :  { %1697 = vmatprep.subr.bf16.mxu1 %v3140_v5  ;;  %v3144_v8 = vld [vmem:[#allocation2 + $0xa4] ss:$16 sps:$4 sm:$0xff]   ;;  %v3148_v10 = vld [vmem:[#allocation2 + $0xa0] ss:$16 sps:$4 sm:$0xff]   ;;  %1727 = vmatprep.mubr.bf16.mxu1 %v3753_v51 }
  0x21   :  { %v3146_v9 = vld [vmem:[#allocation2 + $0x2a4] ss:$16 sps:$4 sm:$0xff]   ;;  %v3149_v11 = vld [vmem:[#allocation2 + $0x2a0] ss:$16 sps:$4 sm:$0xff]  }
  0x22   :  { %1657 = vmatpush1.bf16.msra.mxu0 %v3142_v6  ;;  %v3150_v12 = vld [vmem:[#allocation2 + $0x84] ss:$16 sps:$4 sm:$0xff]   ;;  %v3154_v14 = vld [vmem:[#allocation2 + $0x80] ss:$16 sps:$4 sm:$0xff]  }
  0x23   :  { %1698 = vmatpush1.bf16.msra.mxu1 %v3143_v7  ;;  %1658 = vmatprep.subr.bf16.mxu0 %v3144_v8  ;;  %v3152_v13 = vld [vmem:[#allocation2 + $0x284] ss:$16 sps:$4 sm:$0xff]   ;;  %v3155_v15 = vld [vmem:[#allocation2 + $0x280] ss:$16 sps:$4 sm:$0xff]   ;;  %v3759_v7 = vcombine.low %v65_v48, %v65_v48 }
  0x24   :  { %1699 = vmatprep.subr.bf16.mxu1 %v3146_v9  ;;  %v3156_v16 = vld [vmem:[#allocation2 + $0x64] ss:$16 sps:$4 sm:$0xff]   ;;  %v3160_v18 = vld [vmem:[#allocation2 + $0x60] ss:$16 sps:$4 sm:$0xff]  }
  0x25   :  { %v3158_v17 = vld [vmem:[#allocation2 + $0x264] ss:$16 sps:$4 sm:$0xff]   ;;  %v3161_v19 = vld [vmem:[#allocation2 + $0x260] ss:$16 sps:$4 sm:$0xff]  }
  0x26   :  { %1659 = vmatpush1.bf16.msra.mxu0 %v3148_v10  ;;  %v3162_v20 = vld [vmem:[#allocation2 + $0x44] ss:$16 sps:$4 sm:$0xff]   ;;  %v3166_v22 = vld [vmem:[#allocation2 + $0x40] ss:$16 sps:$4 sm:$0xff]  }
  0x27   :  { %1700 = vmatpush1.bf16.msra.mxu1 %v3149_v11  ;;  %1660 = vmatprep.subr.bf16.mxu0 %v3150_v12  ;;  %v3164_v21 = vld [vmem:[#allocation2 + $0x244] ss:$16 sps:$4 sm:$0xff]   ;;  %v3167_v23 = vld [vmem:[#allocation2 + $0x240] ss:$16 sps:$4 sm:$0xff]  }
  0x28   :  { %1701 = vmatprep.subr.bf16.mxu1 %v3152_v13  ;;  %v3168_v24 = vld [vmem:[#allocation2 + $0x24] ss:$16 sps:$4 sm:$0xff]   ;;  %v3172_v26 = vld [vmem:[#allocation2 + $0x20] ss:$16 sps:$4 sm:$0xff]  }
  0x29   :  { %v3170_v25 = vld [vmem:[#allocation2 + $0x224] ss:$16 sps:$4 sm:$0xff]   ;;  %v3173_v27 = vld [vmem:[#allocation2 + $0x220] ss:$16 sps:$4 sm:$0xff]  }
  0x2a   :  { %1661 = vmatpush1.bf16.msra.mxu0 %v3154_v14  ;;  %v3174_v28 = vld [vmem:[#allocation2 + $0x4] ss:$16 sps:$4 sm:$0xff]   ;;  %v3178_v30 = vld [vmem:[#allocation2] ss:$16 sps:$4 sm:$0xff]  }
  0x2b   :  { %1702 = vmatpush1.bf16.msra.mxu1 %v3155_v15  ;;  %1662 = vmatprep.subr.bf16.mxu0 %v3156_v16  ;;  %v3176_v29 = vld [vmem:[#allocation2 + $0x204] ss:$16 sps:$4 sm:$0xff]   ;;  %v3179_v31 = vld [vmem:[#allocation2 + $0x200] ss:$16 sps:$4 sm:$0xff]  }
  0x2c   :  { %1703 = vmatprep.subr.bf16.mxu1 %v3158_v17  ;;  %v3180_v32 = vld [vmem:[#allocation2 + $0x1e4] ss:$16 sps:$4 sm:$0xff]   ;;  %v3184_v34 = vld [vmem:[#allocation2 + $0x1e0] ss:$16 sps:$4 sm:$0xff]  }
  0x2d   :  { %v3182_v33 = vld [vmem:[#allocation2 + $0x3e4] ss:$16 sps:$4 sm:$0xff]   ;;  %v3185_v35 = vld [vmem:[#allocation2 + $0x3e0] ss:$16 sps:$4 sm:$0xff]  }
  0x2e   :  { %1663 = vmatpush1.bf16.msra.mxu0 %v3160_v18  ;;  %v3186_v36 = vld [vmem:[#allocation2 + $0x1c4] ss:$16 sps:$4 sm:$0xff]   ;;  %v3190_v38 = vld [vmem:[#allocation2 + $0x1c0] ss:$16 sps:$4 sm:$0xff]  }
  0x2f   :  { %1704 = vmatpush1.bf16.msra.mxu1 %v3161_v19  ;;  %1664 = vmatprep.subr.bf16.mxu0 %v3162_v20  ;;  %v3188_v37 = vld [vmem:[#allocation2 + $0x3c4] ss:$16 sps:$4 sm:$0xff]   ;;  %v3191_v39 = vld [vmem:[#allocation2 + $0x3c0] ss:$16 sps:$4 sm:$0xff]  }
  0x30   :  { %1705 = vmatprep.subr.bf16.mxu1 %v3164_v21  ;;  %v3192_v40 = vld [vmem:[#allocation2 + $0x1a4] ss:$16 sps:$4 sm:$0xff]   ;;  %v3196_v42 = vld [vmem:[#allocation2 + $0x1a0] ss:$16 sps:$4 sm:$0xff]  }
  0x31   :  { %v3194_v41 = vld [vmem:[#allocation2 + $0x3a4] ss:$16 sps:$4 sm:$0xff]   ;;  %v3197_v43 = vld [vmem:[#allocation2 + $0x3a0] ss:$16 sps:$4 sm:$0xff]  }
  0x32   :  { %1665 = vmatpush1.bf16.msra.mxu0 %v3166_v22  ;;  %v3198_v44 = vld [vmem:[#allocation2 + $0x184] ss:$16 sps:$4 sm:$0xff]   ;;  %v3202_v49 = vld [vmem:[#allocation2 + $0x180] ss:$16 sps:$4 sm:$0xff]  }
  0x33   :  { %1706 = vmatpush1.bf16.msra.mxu1 %v3167_v23  ;;  %1666 = vmatprep.subr.bf16.mxu0 %v3168_v24  ;;  %v3200_v45 = vld [vmem:[#allocation2 + $0x384] ss:$16 sps:$4 sm:$0xff]   ;;  %v3203_v50 = vld [vmem:[#allocation2 + $0x380] ss:$16 sps:$4 sm:$0xff]  }
  0x34   :  { %1707 = vmatprep.subr.bf16.mxu1 %v3170_v25  ;;  %v64_v46 = vld [vmem:[%s4174_s0] sm:$0xff] }
  0x35   :  { %v3748_v47 = vcombine.high %v64_v46, %v64_v46  ;;  %v3204_v52 = vld [vmem:[#allocation2 + $0x164] ss:$16 sps:$4 sm:$0xff]   ;;  %v3208_v54 = vld [vmem:[#allocation2 + $0x160] ss:$16 sps:$4 sm:$0xff]   ;;  %v3757_v6 = vcombine.low %v64_v46, %v64_v46 }
  0x36   :  { %1667 = vmatpush1.bf16.msra.mxu0 %v3172_v26  ;;  %v3206_v53 = vld [vmem:[#allocation2 + $0x364] ss:$16 sps:$4 sm:$0xff]   ;;  %v3209_v55 = vld [vmem:[#allocation2 + $0x360] ss:$16 sps:$4 sm:$0xff]  }
  0x37   :  { %1708 = vmatpush1.bf16.msra.mxu1 %v3173_v27  ;;  %1668 = vmatprep.subr.bf16.mxu0 %v3174_v28  ;;  %v3210_v56 = vld [vmem:[#allocation2 + $0x144] ss:$16 sps:$4 sm:$0xff]   ;;  %v3214_v58 = vld [vmem:[#allocation2 + $0x140] ss:$16 sps:$4 sm:$0xff]  }
  0x38   :  { %1709 = vmatprep.subr.bf16.mxu1 %v3176_v29  ;;  %1686 = vmatprep.mubr.bf16.mxu0 %v3748_v47  ;;  %v3212_v57 = vld [vmem:[#allocation2 + $0x344] ss:$16 sps:$4 sm:$0xff]   ;;  %v3215_v59 = vld [vmem:[#allocation2 + $0x340] ss:$16 sps:$4 sm:$0xff]  }
  0x39   :  { %v3216_v60 = vld [vmem:[#allocation2 + $0x124] ss:$16 sps:$4 sm:$0xff]   ;;  %v3220_v62 = vld [vmem:[#allocation2 + $0x120] ss:$16 sps:$4 sm:$0xff]  }
  0x3a   :  { %1669 = vmatpush1.bf16.msra.mxu0 %v3178_v30  ;;  %v3218_v61 = vld [vmem:[#allocation2 + $0x324] ss:$16 sps:$4 sm:$0xff]   ;;  %v3221_v63 = vld [vmem:[#allocation2 + $0x320] ss:$16 sps:$4 sm:$0xff]  }
  0x3b   :  { %1710 = vmatpush1.bf16.msra.mxu1 %v3179_v31  ;;  %1670 = vmatprep.subr.bf16.mxu0 %v3180_v32  ;;  %v3222_v0 = vld [vmem:[#allocation2 + $0x104] ss:$16 sps:$4 sm:$0xff]   ;;  %v3226_v2 = vld [vmem:[#allocation2 + $0x100] ss:$16 sps:$4 sm:$0xff]  }
  0x3c   :  { %1711 = vmatprep.subr.bf16.mxu1 %v3182_v33  ;;  %v3224_v1 = vld [vmem:[#allocation2 + $0x304] ss:$16 sps:$4 sm:$0xff]   ;;  %v3227_v3 = vld [vmem:[#allocation2 + $0x300] ss:$16 sps:$4 sm:$0xff]   ;;  %v3771_v33 = vld [vmem:[%s4174_s0 + $0x18] sm:$0xff] }
  0x3d   :  { %v3234_v4 = vld [vmem:[#allocation2 + $0x4e4] ss:$16 sps:$4 sm:$0xff]   ;;  %v3232_v8 = vld [vmem:[#allocation2 + $0x4e0] ss:$16 sps:$4 sm:$0xff]  }
  0x3e   :  { %1671 = vmatpush2.bf16.msra.mxu0 %v3184_v34  ;;  %v3237_v5 = vld [vmem:[#allocation2 + $0x6e4] ss:$16 sps:$4 sm:$0xff]   ;;  %v3235_v9 = vld [vmem:[#allocation2 + $0x6e0] ss:$16 sps:$4 sm:$0xff]  }
  0x3f   :  { %1712 = vmatpush2.bf16.msra.mxu1 %v3185_v35  ;;  %1672 = vmatprep.subr.bf16.mxu0 %v3186_v36  ;;  %v3240_v10 = vld [vmem:[#allocation2 + $0x4c4] ss:$16 sps:$4 sm:$0xff]   ;;  %v3238_v12 = vld [vmem:[#allocation2 + $0x4c0] ss:$16 sps:$4 sm:$0xff]  }
  0x40   :  { %1713 = vmatprep.subr.bf16.mxu1 %v3188_v37  ;;  %v3243_v11 = vld [vmem:[#allocation2 + $0x6c4] ss:$16 sps:$4 sm:$0xff]   ;;  %v3241_v13 = vld [vmem:[#allocation2 + $0x6c0] ss:$16 sps:$4 sm:$0xff]   ;;  %v3779_v37 = vcombine.high %v3771_v33, %v3771_v33 }
  0x41   :  { %v3246_v14 = vld [vmem:[#allocation2 + $0x4a4] ss:$16 sps:$4 sm:$0xff]   ;;  %v3244_v16 = vld [vmem:[#allocation2 + $0x4a0] ss:$16 sps:$4 sm:$0xff]  }
  0x42   :  { %1673 = vmatpush2.bf16.msra.mxu0 %v3190_v38  ;;  %v3249_v15 = vld [vmem:[#allocation2 + $0x6a4] ss:$16 sps:$4 sm:$0xff]   ;;  %v3247_v17 = vld [vmem:[#allocation2 + $0x6a0] ss:$16 sps:$4 sm:$0xff]  }
  0x43   :  { %1714 = vmatpush2.bf16.msra.mxu1 %v3191_v39  ;;  %1674 = vmatprep.subr.bf16.mxu0 %v3192_v40  ;;  %v3252_v18 = vld [vmem:[#allocation2 + $0x484] ss:$16 sps:$4 sm:$0xff]   ;;  %v3250_v20 = vld [vmem:[#allocation2 + $0x480] ss:$16 sps:$4 sm:$0xff]  }
  0x44   :  { %1715 = vmatprep.subr.bf16.mxu1 %v3194_v41  ;;  %v3255_v19 = vld [vmem:[#allocation2 + $0x684] ss:$16 sps:$4 sm:$0xff]   ;;  %v3253_v21 = vld [vmem:[#allocation2 + $0x680] ss:$16 sps:$4 sm:$0xff]  }
  0x45   :  { %v3258_v22 = vld [vmem:[#allocation2 + $0x464] ss:$16 sps:$4 sm:$0xff]   ;;  %v3256_v24 = vld [vmem:[#allocation2 + $0x460] ss:$16 sps:$4 sm:$0xff]  }
  0x46   :  { %1675 = vmatpush2.bf16.msra.mxu0 %v3196_v42  ;;  %v3261_v23 = vld [vmem:[#allocation2 + $0x664] ss:$16 sps:$4 sm:$0xff]   ;;  %v3259_v25 = vld [vmem:[#allocation2 + $0x660] ss:$16 sps:$4 sm:$0xff]  }
  0x47   :  { %1716 = vmatpush2.bf16.msra.mxu1 %v3197_v43  ;;  %1676 = vmatprep.subr.bf16.mxu0 %v3198_v44  ;;  %v3264_v26 = vld [vmem:[#allocation2 + $0x444] ss:$16 sps:$4 sm:$0xff]   ;;  %v3262_v28 = vld [vmem:[#allocation2 + $0x440] ss:$16 sps:$4 sm:$0xff]  }
  0x48   :  { %1717 = vmatprep.subr.bf16.mxu1 %v3200_v45  ;;  %v3267_v27 = vld [vmem:[#allocation2 + $0x644] ss:$16 sps:$4 sm:$0xff]   ;;  %v3265_v29 = vld [vmem:[#allocation2 + $0x640] ss:$16 sps:$4 sm:$0xff]  }
  0x49   :  { %v3270_v30 = vld [vmem:[#allocation2 + $0x424] ss:$16 sps:$4 sm:$0xff]   ;;  %v3268_v34 = vld [vmem:[#allocation2 + $0x420] ss:$16 sps:$4 sm:$0xff]  }
  0x4a   :  { %1677 = vmatpush2.bf16.msra.mxu0 %v3202_v49  ;;  %v3273_v31 = vld [vmem:[#allocation2 + $0x624] ss:$16 sps:$4 sm:$0xff]   ;;  %v3271_v35 = vld [vmem:[#allocation2 + $0x620] ss:$16 sps:$4 sm:$0xff]  }
  0x4b   :  { %1718 = vmatpush2.bf16.msra.mxu1 %v3203_v50  ;;  %1678 = vmatprep.subr.bf16.mxu0 %v3204_v52  ;;  %v3766_v32 = vld [vmem:[%s4174_s0 + $0x10] sm:$0xff] }
  0x4c   :  { %1719 = vmatprep.subr.bf16.mxu1 %v3206_v53  ;;  %v3775_v36 = vcombine.high %v3766_v32, %v3766_v32  ;;  %v3276_v38 = vld [vmem:[#allocation2 + $0x404] ss:$16 sps:$4 sm:$0xff]   ;;  %v3274_v40 = vld [vmem:[#allocation2 + $0x400] ss:$16 sps:$4 sm:$0xff]  }
  0x4d   :  { %v3279_v39 = vld [vmem:[#allocation2 + $0x604] ss:$16 sps:$4 sm:$0xff]   ;;  %v3277_v41 = vld [vmem:[#allocation2 + $0x600] ss:$16 sps:$4 sm:$0xff]  }
  0x4e   :  { %1679 = vmatpush2.bf16.msra.mxu0 %v3208_v54  ;;  %v3282_v42 = vld [vmem:[#allocation2 + $0x5e4] ss:$16 sps:$4 sm:$0xff]   ;;  %v3280_v44 = vld [vmem:[#allocation2 + $0x5e0] ss:$16 sps:$4 sm:$0xff]  }
  0x4f   :  { %1720 = vmatpush2.bf16.msra.mxu1 %v3209_v55  ;;  %1680 = vmatprep.subr.bf16.mxu0 %v3210_v56  ;;  %v3285_v43 = vld [vmem:[#allocation2 + $0x7e4] ss:$16 sps:$4 sm:$0xff]   ;;  %v3283_v45 = vld [vmem:[#allocation2 + $0x7e0] ss:$16 sps:$4 sm:$0xff]  }
  0x50   :  { %1721 = vmatprep.subr.bf16.mxu1 %v3212_v57  ;;  %v3288_v46 = vld [vmem:[#allocation2 + $0x5c4] ss:$16 sps:$4 sm:$0xff]   ;;  %v3286_v49 = vld [vmem:[#allocation2 + $0x5c0] ss:$16 sps:$4 sm:$0xff]  }
  0x51   :  { %v3291_v48 = vld [vmem:[#allocation2 + $0x7c4] ss:$16 sps:$4 sm:$0xff]   ;;  %v3289_v50 = vld [vmem:[#allocation2 + $0x7c0] ss:$16 sps:$4 sm:$0xff]  }
  0x52   :  { %1681 = vmatpush2.bf16.msra.mxu0 %v3214_v58  ;;  %v3294_v52 = vld [vmem:[#allocation2 + $0x5a4] ss:$16 sps:$4 sm:$0xff]   ;;  %v3292_v54 = vld [vmem:[#allocation2 + $0x5a0] ss:$16 sps:$4 sm:$0xff]  }
  0x53   :  { %1722 = vmatpush2.bf16.msra.mxu1 %v3215_v59  ;;  %1682 = vmatprep.subr.bf16.mxu0 %v3216_v60  ;;  %v3297_v53 = vld [vmem:[#allocation2 + $0x7a4] ss:$16 sps:$4 sm:$0xff]   ;;  %v3295_v55 = vld [vmem:[#allocation2 + $0x7a0] ss:$16 sps:$4 sm:$0xff]  }
  0x54   :  { %1723 = vmatprep.subr.bf16.mxu1 %v3218_v61  ;;  %v3300_v56 = vld [vmem:[#allocation2 + $0x584] ss:$16 sps:$4 sm:$0xff]   ;;  %v3298_v58 = vld [vmem:[#allocation2 + $0x580] ss:$16 sps:$4 sm:$0xff]  }
  0x55   :  { %v3303_v57 = vld [vmem:[#allocation2 + $0x784] ss:$16 sps:$4 sm:$0xff]   ;;  %v3301_v59 = vld [vmem:[#allocation2 + $0x780] ss:$16 sps:$4 sm:$0xff]  }
  0x56   :  { %1683 = vmatpush2.bf16.msra.mxu0 %v3220_v62  ;;  %v3306_v60 = vld [vmem:[#allocation2 + $0x564] ss:$16 sps:$4 sm:$0xff]   ;;  %v3304_v62 = vld [vmem:[#allocation2 + $0x560] ss:$16 sps:$4 sm:$0xff]  }
  0x57   :  { %1724 = vmatpush2.bf16.msra.mxu1 %v3221_v63  ;;  %1684 = vmatprep.subr.bf16.mxu0 %v3222_v0  ;;  %v3309_v61 = vld [vmem:[#allocation2 + $0x764] ss:$16 sps:$4 sm:$0xff]   ;;  %v3307_v63 = vld [vmem:[#allocation2 + $0x760] ss:$16 sps:$4 sm:$0xff]  }
  0x58   :  { %1725 = vmatprep.subr.bf16.mxu1 %v3224_v1  ;;  %v3312_v0 = vld [vmem:[#allocation2 + $0x544] ss:$16 sps:$4 sm:$0xff]  }
  0x59   :  { %v3315_v1 = vld [vmem:[#allocation2 + $0x744] ss:$16 sps:$4 sm:$0xff]  }
  0x5a   :  { %1685 = vmatpush2.bf16.msra.mxu0 %v3226_v2  ;;  %v3310_v2 = vld [vmem:[#allocation2 + $0x540] ss:$16 sps:$4 sm:$0xff]  }
  0x5b   :  { %1726 = vmatpush2.bf16.msra.mxu1 %v3227_v3  ;;  %1736 = vmatprep.subr.bf16.mxu0 %v3234_v4  ;;  %v3313_v3 = vld [vmem:[#allocation2 + $0x740] ss:$16 sps:$4 sm:$0xff]   ;;  %v3318_v4 = vld [vmem:[#allocation2 + $0x524] ss:$16 sps:$4 sm:$0xff]  }
  0x5c   :  { %1777 = vmatprep.subr.bf16.mxu1 %v3237_v5  ;;  %v3321_v5 = vld [vmem:[#allocation2 + $0x724] ss:$16 sps:$4 sm:$0xff]  }
  0x5d   :  { %1687 = vmatmul.mubr.bf16.vlgmr.msra.gmra.mxu0 %v3757_v6 }
  0x5e   :  { %1728 = vmatmul.mubr.bf16.vlgmr.msra.gmra.mxu1 %v3759_v7  ;;  %1737 = vmatpush1.bf16.msra.mxu0 %v3232_v8  ;;  %v3316_v8 = vld [vmem:[#allocation2 + $0x520] ss:$16 sps:$4 sm:$0xff]  }
  0x5f   :  { %1778 = vmatpush1.bf16.msra.mxu1 %v3235_v9  ;;  %1738 = vmatprep.subr.bf16.mxu0 %v3240_v10  ;;  %v3319_v9 = vld [vmem:[#allocation2 + $0x720] ss:$16 sps:$4 sm:$0xff]   ;;  %v3324_v10 = vld [vmem:[#allocation2 + $0x504] ss:$16 sps:$4 sm:$0xff]  }
  0x60   :  { %1779 = vmatprep.subr.bf16.mxu1 %v3243_v11  ;;  %1768 = vmatprep.mubr.bf16.mxu0 %v3775_v36  ;;  %v3327_v11 = vld [vmem:[#allocation2 + $0x704] ss:$16 sps:$4 sm:$0xff]  }
  0x61   :  { %1809 = vmatprep.mubr.bf16.mxu1 %v3779_v37 }
  0x62   :  { %1739 = vmatpush1.bf16.msra.mxu0 %v3238_v12  ;;  %v3322_v12 = vld [vmem:[#allocation2 + $0x500] ss:$16 sps:$4 sm:$0xff]  }
  0x63   :  { %1780 = vmatpush1.bf16.msra.mxu1 %v3241_v13  ;;  %1740 = vmatprep.subr.bf16.mxu0 %v3246_v14  ;;  %v3325_v13 = vld [vmem:[#allocation2 + $0x700] ss:$16 sps:$4 sm:$0xff]   ;;  %v3334_v14 = vld [vmem:[#allocation2 + $0xec] ss:$16 sps:$4 sm:$0xff]  }
  0x64   :  { %1781 = vmatprep.subr.bf16.mxu1 %v3249_v15  ;;  %v3337_v15 = vld [vmem:[#allocation2 + $0x2ec] ss:$16 sps:$4 sm:$0xff]  }
  0x66   :  { %1741 = vmatpush1.bf16.msra.mxu0 %v3244_v16  ;;  %v3785_v16 = vcombine.low %v3766_v32, %v3766_v32  ;;  %v3358_v32 = vld [vmem:[#allocation2 + $0x6c] ss:$16 sps:$4 sm:$0xff]  }
  0x67   :  { %1782 = vmatpush1.bf16.msra.mxu1 %v3247_v17  ;;  %1742 = vmatprep.subr.bf16.mxu0 %v3252_v18  ;;  %v3789_v17 = vcombine.low %v3771_v33, %v3771_v33  ;;  %v3332_v18 = vld [vmem:[#allocation2 + $0xe8] ss:$16 sps:$4 sm:$0xff]   ;;  %v3361_v33 = vld [vmem:[#allocation2 + $0x26c] ss:$16 sps:$4 sm:$0xff]  }
  0x68   :  { %1783 = vmatprep.subr.bf16.mxu1 %v3255_v19  ;;  %v3335_v19 = vld [vmem:[#allocation2 + $0x2e8] ss:$16 sps:$4 sm:$0xff]  }
  0x6a   :  { %1743 = vmatpush1.bf16.msra.mxu0 %v3250_v20  ;;  %v3340_v20 = vld [vmem:[#allocation2 + $0xcc] ss:$16 sps:$4 sm:$0xff]  }
  0x6b   :  { %1784 = vmatpush1.bf16.msra.mxu1 %v3253_v21  ;;  %1744 = vmatprep.subr.bf16.mxu0 %v3258_v22  ;;  %v3343_v21 = vld [vmem:[#allocation2 + $0x2cc] ss:$16 sps:$4 sm:$0xff]   ;;  %v3338_v22 = vld [vmem:[#allocation2 + $0xc8] ss:$16 sps:$4 sm:$0xff]  }
  0x6c   :  { %1785 = vmatprep.subr.bf16.mxu1 %v3261_v23  ;;  %v3341_v23 = vld [vmem:[#allocation2 + $0x2c8] ss:$16 sps:$4 sm:$0xff]  }
  0x6e   :  { %1745 = vmatpush1.bf16.msra.mxu0 %v3256_v24  ;;  %v3346_v24 = vld [vmem:[#allocation2 + $0xac] ss:$16 sps:$4 sm:$0xff]  }
  0x6f   :  { %1786 = vmatpush1.bf16.msra.mxu1 %v3259_v25  ;;  %1746 = vmatprep.subr.bf16.mxu0 %v3264_v26  ;;  %v3349_v25 = vld [vmem:[#allocation2 + $0x2ac] ss:$16 sps:$4 sm:$0xff]   ;;  %v3344_v26 = vld [vmem:[#allocation2 + $0xa8] ss:$16 sps:$4 sm:$0xff]  }
  0x70   :  { %1787 = vmatprep.subr.bf16.mxu1 %v3267_v27  ;;  %v3347_v27 = vld [vmem:[#allocation2 + $0x2a8] ss:$16 sps:$4 sm:$0xff]  }
  0x72   :  { %1747 = vmatpush1.bf16.msra.mxu0 %v3262_v28  ;;  %v3352_v28 = vld [vmem:[#allocation2 + $0x8c] ss:$16 sps:$4 sm:$0xff]  }
  0x73   :  { %1788 = vmatpush1.bf16.msra.mxu1 %v3265_v29  ;;  %1748 = vmatprep.subr.bf16.mxu0 %v3270_v30  ;;  %v3355_v29 = vld [vmem:[#allocation2 + $0x28c] ss:$16 sps:$4 sm:$0xff]   ;;  %v3350_v30 = vld [vmem:[#allocation2 + $0x88] ss:$16 sps:$4 sm:$0xff]  }
  0x74   :  { %1789 = vmatprep.subr.bf16.mxu1 %v3273_v31  ;;  %v3353_v31 = vld [vmem:[#allocation2 + $0x288] ss:$16 sps:$4 sm:$0xff]  }
  0x76   :  { %1749 = vmatpush1.bf16.msra.mxu0 %v3268_v34  ;;  %v3356_v34 = vld [vmem:[#allocation2 + $0x68] ss:$16 sps:$4 sm:$0xff]  }
  0x77   :  { %1790 = vmatpush1.bf16.msra.mxu1 %v3271_v35  ;;  %1750 = vmatprep.subr.bf16.mxu0 %v3276_v38  ;;  %v3367_v35 = vld [vmem:[#allocation2 + $0x24c] ss:$16 sps:$4 sm:$0xff]   ;;  %v3362_v38 = vld [vmem:[#allocation2 + $0x48] ss:$16 sps:$4 sm:$0xff]  }
  0x78   :  { %1791 = vmatprep.subr.bf16.mxu1 %v3279_v39  ;;  %v3365_v39 = vld [vmem:[#allocation2 + $0x248] ss:$16 sps:$4 sm:$0xff]  }
  0x7a   :  { %1751 = vmatpush1.bf16.msra.mxu0 %v3274_v40  ;;  %v3370_v40 = vld [vmem:[#allocation2 + $0x2c] ss:$16 sps:$4 sm:$0xff]  }
  0x7b   :  { %1792 = vmatpush1.bf16.msra.mxu1 %v3277_v41  ;;  %1752 = vmatprep.subr.bf16.mxu0 %v3282_v42  ;;  %v3373_v41 = vld [vmem:[#allocation2 + $0x22c] ss:$16 sps:$4 sm:$0xff]   ;;  %v3368_v42 = vld [vmem:[#allocation2 + $0x28] ss:$16 sps:$4 sm:$0xff]  }
  0x7c   :  { %1793 = vmatprep.subr.bf16.mxu1 %v3285_v43  ;;  %v3371_v43 = vld [vmem:[#allocation2 + $0x228] ss:$16 sps:$4 sm:$0xff]  }
  0x7e   :  { %1753 = vmatpush2.bf16.msra.mxu0 %v3280_v44  ;;  %v3376_v44 = vld [vmem:[#allocation2 + $0xc] ss:$16 sps:$4 sm:$0xff]  }
  0x7f   :  { %1794 = vmatpush2.bf16.msra.mxu1 %v3283_v45  ;;  %1754 = vmatprep.subr.bf16.mxu0 %v3288_v46  ;;  %v3379_v45 = vld [vmem:[#allocation2 + $0x20c] ss:$16 sps:$4 sm:$0xff]   ;;  %v3374_v46 = vld [vmem:[#allocation2 + $0x8] ss:$16 sps:$4 sm:$0xff]  }
  0x80   :  { %1795 = vmatprep.subr.bf16.mxu1 %v3291_v48  ;;  %v3377_v48 = vld [vmem:[#allocation2 + $0x208] ss:$16 sps:$4 sm:$0xff]  }
  0x82   :  { %1755 = vmatpush2.bf16.msra.mxu0 %v3286_v49  ;;  %v3382_v49 = vld [vmem:[#allocation2 + $0x1ec] ss:$16 sps:$4 sm:$0xff]  }
  0x83   :  { %1796 = vmatpush2.bf16.msra.mxu1 %v3289_v50  ;;  %1756 = vmatprep.subr.bf16.mxu0 %v3294_v52  ;;  %v3385_v50 = vld [vmem:[#allocation2 + $0x3ec] ss:$16 sps:$4 sm:$0xff]   ;;  %v3380_v52 = vld [vmem:[#allocation2 + $0x1e8] ss:$16 sps:$4 sm:$0xff]  }
  0x84   :  { %1797 = vmatprep.subr.bf16.mxu1 %v3297_v53  ;;  %v3383_v53 = vld [vmem:[#allocation2 + $0x3e8] ss:$16 sps:$4 sm:$0xff]  }
  0x86   :  { %1757 = vmatpush2.bf16.msra.mxu0 %v3292_v54  ;;  %v3388_v54 = vld [vmem:[#allocation2 + $0x1cc] ss:$16 sps:$4 sm:$0xff]  }
  0x87   :  { %1798 = vmatpush2.bf16.msra.mxu1 %v3295_v55  ;;  %1758 = vmatprep.subr.bf16.mxu0 %v3300_v56  ;;  %v3391_v55 = vld [vmem:[#allocation2 + $0x3cc] ss:$16 sps:$4 sm:$0xff]   ;;  %v3386_v56 = vld [vmem:[#allocation2 + $0x1c8] ss:$16 sps:$4 sm:$0xff]  }
  0x88   :  { %1799 = vmatprep.subr.bf16.mxu1 %v3303_v57  ;;  %v3389_v57 = vld [vmem:[#allocation2 + $0x3c8] ss:$16 sps:$4 sm:$0xff]  }
  0x8a   :  { %1759 = vmatpush2.bf16.msra.mxu0 %v3298_v58  ;;  %v3394_v58 = vld [vmem:[#allocation2 + $0x1ac] ss:$16 sps:$4 sm:$0xff]  }
  0x8b   :  { %1800 = vmatpush2.bf16.msra.mxu1 %v3301_v59  ;;  %1760 = vmatprep.subr.bf16.mxu0 %v3306_v60  ;;  %v3397_v59 = vld [vmem:[#allocation2 + $0x3ac] ss:$16 sps:$4 sm:$0xff]   ;;  %v3392_v60 = vld [vmem:[#allocation2 + $0x1a8] ss:$16 sps:$4 sm:$0xff]  }
  0x8c   :  { %1801 = vmatprep.subr.bf16.mxu1 %v3309_v61  ;;  %v3395_v61 = vld [vmem:[#allocation2 + $0x3a8] ss:$16 sps:$4 sm:$0xff]  }
  0x8e   :  { %1761 = vmatpush2.bf16.msra.mxu0 %v3304_v62  ;;  %v3400_v62 = vld [vmem:[#allocation2 + $0x18c] ss:$16 sps:$4 sm:$0xff]  }
  0x8f   :  { %1802 = vmatpush2.bf16.msra.mxu1 %v3307_v63  ;;  %1762 = vmatprep.subr.bf16.mxu0 %v3312_v0  ;;  %v3403_v63 = vld [vmem:[#allocation2 + $0x38c] ss:$16 sps:$4 sm:$0xff]   ;;  %v3398_v0 = vld [vmem:[#allocation2 + $0x188] ss:$16 sps:$4 sm:$0xff]  }
  0x90   :  { %1803 = vmatprep.subr.bf16.mxu1 %v3315_v1  ;;  %v3401_v1 = vld [vmem:[#allocation2 + $0x388] ss:$16 sps:$4 sm:$0xff]  }
  0x92   :  { %1763 = vmatpush2.bf16.msra.mxu0 %v3310_v2  ;;  %v3406_v2 = vld [vmem:[#allocation2 + $0x16c] ss:$16 sps:$4 sm:$0xff]  }
  0x93   :  { %1804 = vmatpush2.bf16.msra.mxu1 %v3313_v3  ;;  %1764 = vmatprep.subr.bf16.mxu0 %v3318_v4  ;;  %v3409_v3 = vld [vmem:[#allocation2 + $0x36c] ss:$16 sps:$4 sm:$0xff]   ;;  %v3404_v4 = vld [vmem:[#allocation2 + $0x168] ss:$16 sps:$4 sm:$0xff]  }
  0x94   :  { %1805 = vmatprep.subr.bf16.mxu1 %v3321_v5  ;;  %v3407_v5 = vld [vmem:[#allocation2 + $0x368] ss:$16 sps:$4 sm:$0xff]  }
  0x96   :  { %1765 = vmatpush2.bf16.msra.mxu0 %v3316_v8  ;;  %v3412_v8 = vld [vmem:[#allocation2 + $0x14c] ss:$16 sps:$4 sm:$0xff]  }
  0x97   :  { %1806 = vmatpush2.bf16.msra.mxu1 %v3319_v9  ;;  %1766 = vmatprep.subr.bf16.mxu0 %v3324_v10  ;;  %v3415_v9 = vld [vmem:[#allocation2 + $0x34c] ss:$16 sps:$4 sm:$0xff]   ;;  %v3410_v10 = vld [vmem:[#allocation2 + $0x148] ss:$16 sps:$4 sm:$0xff]  }
  0x98   :  { %1807 = vmatprep.subr.bf16.mxu1 %v3327_v11  ;;  %v3413_v11 = vld [vmem:[#allocation2 + $0x348] ss:$16 sps:$4 sm:$0xff]  }
  0x9a   :  { %1767 = vmatpush2.bf16.msra.mxu0 %v3322_v12  ;;  %v3418_v12 = vld [vmem:[#allocation2 + $0x12c] ss:$16 sps:$4 sm:$0xff]  }
  0x9b   :  { %1808 = vmatpush2.bf16.msra.mxu1 %v3325_v13  ;;  %1818 = vmatprep.subr.bf16.mxu0 %v3334_v14  ;;  %v3421_v13 = vld [vmem:[#allocation2 + $0x32c] ss:$16 sps:$4 sm:$0xff]   ;;  %v3416_v14 = vld [vmem:[#allocation2 + $0x128] ss:$16 sps:$4 sm:$0xff]  }
  0x9c   :  { %1859 = vmatprep.subr.bf16.mxu1 %v3337_v15  ;;  %v3419_v15 = vld [vmem:[#allocation2 + $0x328] ss:$16 sps:$4 sm:$0xff]  }
  0x9d   :  { %1769 = vmatmul.mubr.bf16.vlgmr.msra.gmra.mxu0 %v3785_v16 }
  0x9e   :  { %1810 = vmatmul.mubr.bf16.vlgmr.msra.gmra.mxu1 %v3789_v17  ;;  %1819 = vmatpush1.bf16.msra.mxu0 %v3332_v18  ;;  %v3424_v18 = vld [vmem:[#allocation2 + $0x10c] ss:$16 sps:$4 sm:$0xff]  }
  0x9f   :  { %1860 = vmatpush1.bf16.msra.mxu1 %v3335_v19  ;;  %1820 = vmatprep.subr.bf16.mxu0 %v3340_v20  ;;  %v3427_v19 = vld [vmem:[#allocation2 + $0x30c] ss:$16 sps:$4 sm:$0xff]   ;;  %v3422_v20 = vld [vmem:[#allocation2 + $0x108] ss:$16 sps:$4 sm:$0xff]  }
  0xa0   :  { %1861 = vmatprep.subr.bf16.mxu1 %v3343_v21  ;;  %1850 = vmatprep.mubr.bf16.mxu0 %v3748_v47  ;;  %v3359_v47 = vld [vmem:[#allocation2 + $0x268] ss:$16 sps:$4 sm:$0xff]  }
  0xa1   :  { %1891 = vmatprep.mubr.bf16.mxu1 %v3753_v51  ;;  %v3364_v51 = vld [vmem:[#allocation2 + $0x4c] ss:$16 sps:$4 sm:$0xff]   ;;  %v3425_v21 = vld [vmem:[#allocation2 + $0x308] ss:$16 sps:$4 sm:$0xff]  }
  0xa2   :  { %1821 = vmatpush1.bf16.msra.mxu0 %v3338_v22  ;;  %v3430_v22 = vld [vmem:[#allocation2 + $0x4ec] ss:$16 sps:$4 sm:$0xff]  }
  0xa3   :  { %1862 = vmatpush1.bf16.msra.mxu1 %v3341_v23  ;;  %1822 = vmatprep.subr.bf16.mxu0 %v3346_v24  ;;  %v3433_v23 = vld [vmem:[#allocation2 + $0x6ec] ss:$16 sps:$4 sm:$0xff]   ;;  %v3428_v24 = vld [vmem:[#allocation2 + $0x4e8] ss:$16 sps:$4 sm:$0xff]  }
  0xa4   :  { %1863 = vmatprep.subr.bf16.mxu1 %v3349_v25  ;;  %v3431_v25 = vld [vmem:[#allocation2 + $0x6e8] ss:$16 sps:$4 sm:$0xff]  }
  0xa6   :  { %1823 = vmatpush1.bf16.msra.mxu0 %v3344_v26  ;;  %v3436_v26 = vld [vmem:[#allocation2 + $0x4cc] ss:$16 sps:$4 sm:$0xff]  }
  0xa7   :  { %1864 = vmatpush1.bf16.msra.mxu1 %v3347_v27  ;;  %1824 = vmatprep.subr.bf16.mxu0 %v3352_v28  ;;  %v3439_v27 = vld [vmem:[#allocation2 + $0x6cc] ss:$16 sps:$4 sm:$0xff]   ;;  %v3434_v28 = vld [vmem:[#allocation2 + $0x4c8] ss:$16 sps:$4 sm:$0xff]  }
  0xa8   :  { %1865 = vmatprep.subr.bf16.mxu1 %v3355_v29  ;;  %v3437_v29 = vld [vmem:[#allocation2 + $0x6c8] ss:$16 sps:$4 sm:$0xff]  }
  0xaa   :  { %1825 = vmatpush1.bf16.msra.mxu0 %v3350_v30  ;;  %v3442_v30 = vld [vmem:[#allocation2 + $0x4ac] ss:$16 sps:$4 sm:$0xff]  }
  0xab   :  { %1866 = vmatpush1.bf16.msra.mxu1 %v3353_v31  ;;  %1826 = vmatprep.subr.bf16.mxu0 %v3358_v32  ;;  %v3445_v31 = vld [vmem:[#allocation2 + $0x6ac] ss:$16 sps:$4 sm:$0xff]   ;;  %v3440_v32 = vld [vmem:[#allocation2 + $0x4a8] ss:$16 sps:$4 sm:$0xff]  }
  0xac   :  { %1867 = vmatprep.subr.bf16.mxu1 %v3361_v33  ;;  %v3443_v33 = vld [vmem:[#allocation2 + $0x6a8] ss:$16 sps:$4 sm:$0xff]  }
  0xae   :  { %1827 = vmatpush1.bf16.msra.mxu0 %v3356_v34  ;;  %v3448_v34 = vld [vmem:[#allocation2 + $0x48c] ss:$16 sps:$4 sm:$0xff]  }
  0xaf   :  { %1868 = vmatpush1.bf16.msra.mxu1 %v3359_v47  ;;  %1828 = vmatprep.subr.bf16.mxu0 %v3364_v51  ;;  %v3451_v47 = vld [vmem:[#allocation2 + $0x68c] ss:$16 sps:$4 sm:$0xff]  }
  0xb0   :  { %1869 = vmatprep.subr.bf16.mxu1 %v3367_v35  ;;  %v3454_v51 = vld [vmem:[#allocation2 + $0x46c] ss:$16 sps:$4 sm:$0xff]  }
  0xb1   :  { %v3457_v35 = vld [vmem:[#allocation2 + $0x66c] ss:$16 sps:$4 sm:$0xff]  }
  0xb2   :  { %1829 = vmatpush1.bf16.msra.mxu0 %v3362_v38  ;;  %v3452_v38 = vld [vmem:[#allocation2 + $0x468] ss:$16 sps:$4 sm:$0xff]  }
  0xb3   :  { %1870 = vmatpush1.bf16.msra.mxu1 %v3365_v39  ;;  %1830 = vmatprep.subr.bf16.mxu0 %v3370_v40  ;;  %v3463_v39 = vld [vmem:[#allocation2 + $0x64c] ss:$16 sps:$4 sm:$0xff]   ;;  %v3458_v40 = vld [vmem:[#allocation2 + $0x448] ss:$16 sps:$4 sm:$0xff]  }
  0xb4   :  { %1871 = vmatprep.subr.bf16.mxu1 %v3373_v41  ;;  %v3461_v41 = vld [vmem:[#allocation2 + $0x648] ss:$16 sps:$4 sm:$0xff]  }
  0xb6   :  { %1831 = vmatpush1.bf16.msra.mxu0 %v3368_v42  ;;  %v3466_v42 = vld [vmem:[#allocation2 + $0x42c] ss:$16 sps:$4 sm:$0xff]  }
  0xb7   :  { %1872 = vmatpush1.bf16.msra.mxu1 %v3371_v43  ;;  %1832 = vmatprep.subr.bf16.mxu0 %v3376_v44  ;;  %v3469_v43 = vld [vmem:[#allocation2 + $0x62c] ss:$16 sps:$4 sm:$0xff]   ;;  %v3464_v44 = vld [vmem:[#allocation2 + $0x428] ss:$16 sps:$4 sm:$0xff]  }
  0xb8   :  { %1873 = vmatprep.subr.bf16.mxu1 %v3379_v45  ;;  %v3467_v45 = vld [vmem:[#allocation2 + $0x628] ss:$16 sps:$4 sm:$0xff]  }
  0xba   :  { %1833 = vmatpush1.bf16.msra.mxu0 %v3374_v46  ;;  %v3472_v46 = vld [vmem:[#allocation2 + $0x40c] ss:$16 sps:$4 sm:$0xff]  }
  0xbb   :  { %1874 = vmatpush1.bf16.msra.mxu1 %v3377_v48  ;;  %1834 = vmatprep.subr.bf16.mxu0 %v3382_v49  ;;  %v3475_v48 = vld [vmem:[#allocation2 + $0x60c] ss:$16 sps:$4 sm:$0xff]   ;;  %v3470_v49 = vld [vmem:[#allocation2 + $0x408] ss:$16 sps:$4 sm:$0xff]  }
  0xbc   :  { %1875 = vmatprep.subr.bf16.mxu1 %v3385_v50  ;;  %v3473_v50 = vld [vmem:[#allocation2 + $0x608] ss:$16 sps:$4 sm:$0xff]  }
  0xbe   :  { %1835 = vmatpush2.bf16.msra.mxu0 %v3380_v52  ;;  %v3478_v52 = vld [vmem:[#allocation2 + $0x5ec] ss:$16 sps:$4 sm:$0xff]  }
  0xbf   :  { %1876 = vmatpush2.bf16.msra.mxu1 %v3383_v53  ;;  %1836 = vmatprep.subr.bf16.mxu0 %v3388_v54  ;;  %v3481_v53 = vld [vmem:[#allocation2 + $0x7ec] ss:$16 sps:$4 sm:$0xff]   ;;  %v3476_v54 = vld [vmem:[#allocation2 + $0x5e8] ss:$16 sps:$4 sm:$0xff]  }
  0xc0   :  { %1877 = vmatprep.subr.bf16.mxu1 %v3391_v55  ;;  %v3479_v55 = vld [vmem:[#allocation2 + $0x7e8] ss:$16 sps:$4 sm:$0xff]  }
  0xc2   :  { %1837 = vmatpush2.bf16.msra.mxu0 %v3386_v56  ;;  %v3484_v56 = vld [vmem:[#allocation2 + $0x5cc] ss:$16 sps:$4 sm:$0xff]  }
  0xc3   :  { %1878 = vmatpush2.bf16.msra.mxu1 %v3389_v57  ;;  %1838 = vmatprep.subr.bf16.mxu0 %v3394_v58  ;;  %v3487_v57 = vld [vmem:[#allocation2 + $0x7cc] ss:$16 sps:$4 sm:$0xff]   ;;  %v3482_v58 = vld [vmem:[#allocation2 + $0x5c8] ss:$16 sps:$4 sm:$0xff]  }
  0xc4   :  { %1879 = vmatprep.subr.bf16.mxu1 %v3397_v59  ;;  %v3485_v59 = vld [vmem:[#allocation2 + $0x7c8] ss:$16 sps:$4 sm:$0xff]  }
  0xc6   :  { %1839 = vmatpush2.bf16.msra.mxu0 %v3392_v60  ;;  %v3490_v60 = vld [vmem:[#allocation2 + $0x5ac] ss:$16 sps:$4 sm:$0xff]  }
  0xc7   :  { %1880 = vmatpush2.bf16.msra.mxu1 %v3395_v61  ;;  %1840 = vmatprep.subr.bf16.mxu0 %v3400_v62  ;;  %v3493_v61 = vld [vmem:[#allocation2 + $0x7ac] ss:$16 sps:$4 sm:$0xff]   ;;  %v3488_v62 = vld [vmem:[#allocation2 + $0x5a8] ss:$16 sps:$4 sm:$0xff]  }
  0xc8   :  { %1881 = vmatprep.subr.bf16.mxu1 %v3403_v63  ;;  %v3491_v63 = vld [vmem:[#allocation2 + $0x7a8] ss:$16 sps:$4 sm:$0xff]  }
  0xca   :  { %1841 = vmatpush2.bf16.msra.mxu0 %v3398_v0  ;;  %v3496_v0 = vld [vmem:[#allocation2 + $0x58c] ss:$16 sps:$4 sm:$0xff]  }
  0xcb   :  { %1882 = vmatpush2.bf16.msra.mxu1 %v3401_v1  ;;  %1842 = vmatprep.subr.bf16.mxu0 %v3406_v2  ;;  %v3499_v1 = vld [vmem:[#allocation2 + $0x78c] ss:$16 sps:$4 sm:$0xff]   ;;  %v3494_v2 = vld [vmem:[#allocation2 + $0x588] ss:$16 sps:$4 sm:$0xff]  }
  0xcc   :  { %1883 = vmatprep.subr.bf16.mxu1 %v3409_v3  ;;  %v3497_v3 = vld [vmem:[#allocation2 + $0x788] ss:$16 sps:$4 sm:$0xff]  }
  0xce   :  { %1843 = vmatpush2.bf16.msra.mxu0 %v3404_v4  ;;  %v3502_v4 = vld [vmem:[#allocation2 + $0x56c] ss:$16 sps:$4 sm:$0xff]  }
  0xcf   :  { %1884 = vmatpush2.bf16.msra.mxu1 %v3407_v5  ;;  %1844 = vmatprep.subr.bf16.mxu0 %v3412_v8  ;;  %v3505_v5 = vld [vmem:[#allocation2 + $0x76c] ss:$16 sps:$4 sm:$0xff]   ;;  %v3500_v8 = vld [vmem:[#allocation2 + $0x568] ss:$16 sps:$4 sm:$0xff]  }
  0xd0   :  { %1885 = vmatprep.subr.bf16.mxu1 %v3415_v9  ;;  %v3503_v9 = vld [vmem:[#allocation2 + $0x768] ss:$16 sps:$4 sm:$0xff]  }
  0xd2   :  { %1845 = vmatpush2.bf16.msra.mxu0 %v3410_v10  ;;  %v3508_v10 = vld [vmem:[#allocation2 + $0x54c] ss:$16 sps:$4 sm:$0xff]  }
  0xd3   :  { %1886 = vmatpush2.bf16.msra.mxu1 %v3413_v11  ;;  %1846 = vmatprep.subr.bf16.mxu0 %v3418_v12  ;;  %v3511_v11 = vld [vmem:[#allocation2 + $0x74c] ss:$16 sps:$4 sm:$0xff]   ;;  %v3506_v12 = vld [vmem:[#allocation2 + $0x548] ss:$16 sps:$4 sm:$0xff]  }
  0xd4   :  { %1887 = vmatprep.subr.bf16.mxu1 %v3421_v13  ;;  %v3509_v13 = vld [vmem:[#allocation2 + $0x748] ss:$16 sps:$4 sm:$0xff]  }
  0xd6   :  { %1847 = vmatpush2.bf16.msra.mxu0 %v3416_v14  ;;  %v3514_v14 = vld [vmem:[#allocation2 + $0x52c] ss:$16 sps:$4 sm:$0xff]  }
  0xd7   :  { %1888 = vmatpush2.bf16.msra.mxu1 %v3419_v15  ;;  %1848 = vmatprep.subr.bf16.mxu0 %v3424_v18  ;;  %v3517_v15 = vld [vmem:[#allocation2 + $0x72c] ss:$16 sps:$4 sm:$0xff]   ;;  %v3512_v18 = vld [vmem:[#allocation2 + $0x528] ss:$16 sps:$4 sm:$0xff]  }
  0xd8   :  { %1889 = vmatprep.subr.bf16.mxu1 %v3427_v19  ;;  %v3515_v19 = vld [vmem:[#allocation2 + $0x728] ss:$16 sps:$4 sm:$0xff]  }
  0xda   :  { %1849 = vmatpush2.bf16.msra.mxu0 %v3422_v20  ;;  %v3520_v20 = vld [vmem:[#allocation2 + $0x50c] ss:$16 sps:$4 sm:$0xff]  }
  0xdb   :  { %1890 = vmatpush2.bf16.msra.mxu1 %v3425_v21  ;;  %1900 = vmatprep.subr.bf16.mxu0 %v3430_v22  ;;  %v3523_v21 = vld [vmem:[#allocation2 + $0x70c] ss:$16 sps:$4 sm:$0xff]   ;;  %v3518_v22 = vld [vmem:[#allocation2 + $0x508] ss:$16 sps:$4 sm:$0xff]  }
  0xdc   :  { %1941 = vmatprep.subr.bf16.mxu1 %v3433_v23  ;;  %v3521_v23 = vld [vmem:[#allocation2 + $0x708] ss:$16 sps:$4 sm:$0xff]  }
  0xdd   :  { %1851 = vmatmul.mubr.bf16.vlgmr.msra.gmra.mxu0 %v3757_v6  ;;  %v3446_v6 = vld [vmem:[#allocation2 + $0x488] ss:$16 sps:$4 sm:$0xff]  }
  0xde   :  { %1892 = vmatmul.mubr.bf16.vlgmr.msra.gmra.mxu1 %v3759_v7  ;;  %1901 = vmatpush1.bf16.msra.mxu0 %v3428_v24  ;;  %v3449_v7 = vld [vmem:[#allocation2 + $0x688] ss:$16 sps:$4 sm:$0xff]   ;;  %v3526_v24 = vld [vmem:[%s4177_s3 + $0x74] ss:$8 sps:$4 sm:$0xff]  }
  0xdf   :  { %1942 = vmatpush1.bf16.msra.mxu1 %v3431_v25  ;;  %1902 = vmatprep.subr.bf16.mxu0 %v3436_v26  ;;  %v3524_v25 = vld [vmem:[%s4177_s3 + $0x70] ss:$8 sps:$4 sm:$0xff]   ;;  %v3529_v26 = vld [vmem:[%s4177_s3 + $0x64] ss:$8 sps:$4 sm:$0xff]  }
  0xe0   :  { %1943 = vmatprep.subr.bf16.mxu1 %v3439_v27  ;;  %1932 = vmatprep.mubr.bf16.mxu0 %v3775_v36  ;;  %v3455_v36 = vld [vmem:[#allocation2 + $0x668] ss:$16 sps:$4 sm:$0xff]  }
  0xe1   :  { %1973 = vmatprep.mubr.bf16.mxu1 %v3779_v37  ;;  %v3460_v37 = vld [vmem:[#allocation2 + $0x44c] ss:$16 sps:$4 sm:$0xff]  }
  0xe2   :  { %1903 = vmatpush1.bf16.msra.mxu0 %v3434_v28 }
  0xe3   :  { %1944 = vmatpush1.bf16.msra.mxu1 %v3437_v29  ;;  %1904 = vmatprep.subr.bf16.mxu0 %v3442_v30  ;;  %v3527_v29 = vld [vmem:[%s4177_s3 + $0x60] ss:$8 sps:$4 sm:$0xff]  }
  0xe4   :  { %1945 = vmatprep.subr.bf16.mxu1 %v3445_v31 }
  0xe6   :  { %1905 = vmatpush1.bf16.msra.mxu0 %v3440_v32  ;;  %v3532_v32 = vld [vmem:[%s4177_s3 + $0x54] ss:$8 sps:$4 sm:$0xff]  }
  0xe7   :  { %1946 = vmatpush1.bf16.msra.mxu1 %v3443_v33  ;;  %1906 = vmatprep.subr.bf16.mxu0 %v3448_v34 }
  0xe8   :  { %1947 = vmatprep.subr.bf16.mxu1 %v3451_v47 }
  0xea   :  { %1907 = vmatpush1.bf16.msra.mxu0 %v3446_v6  ;;  %v3535_v6 = vld [vmem:[%s4177_s3 + $0x44] ss:$8 sps:$4 sm:$0xff]  }
  0xeb   :  { %1948 = vmatpush1.bf16.msra.mxu1 %v3449_v7  ;;  %1908 = vmatprep.subr.bf16.mxu0 %v3454_v51  ;;  %v3572_v7 = vld [vmem:[%s4177_s3 + $0x170] ss:$8 sps:$4 sm:$0xff]   ;;  %v3574_v51 = vld [vmem:[%s4177_s3 + $0x174] ss:$8 sps:$4 sm:$0xff]  }
  0xec   :  { %1949 = vmatprep.subr.bf16.mxu1 %v3457_v35  ;;  %v3577_v35 = vld [vmem:[%s4177_s3 + $0x164] ss:$8 sps:$4 sm:$0xff]  }
  0xee   :  { %1909 = vmatpush1.bf16.msra.mxu0 %v3452_v38  ;;  %v3533_v38 = vld [vmem:[%s4177_s3 + $0x40] ss:$8 sps:$4 sm:$0xff]  }
  0xef   :  { %1950 = vmatpush1.bf16.msra.mxu1 %v3455_v36  ;;  %1910 = vmatprep.subr.bf16.mxu0 %v3460_v37  ;;  %v3575_v36 = vld [vmem:[%s4177_s3 + $0x160] ss:$8 sps:$4 sm:$0xff]   ;;  %v3538_v37 = vld [vmem:[%s4177_s3 + $0x34] ss:$8 sps:$4 sm:$0xff]  }
  0xf0   :  { %1951 = vmatprep.subr.bf16.mxu1 %v3463_v39  ;;  %v3580_v39 = vld [vmem:[%s4177_s3 + $0x154] ss:$8 sps:$4 sm:$0xff]  }
  0xf2   :  { %1911 = vmatpush1.bf16.msra.mxu0 %v3458_v40  ;;  %v3536_v40 = vld [vmem:[%s4177_s3 + $0x30] ss:$8 sps:$4 sm:$0xff]  }
  0xf3   :  { %1952 = vmatpush1.bf16.msra.mxu1 %v3461_v41  ;;  %1912 = vmatprep.subr.bf16.mxu0 %v3466_v42  ;;  %v3578_v41 = vld [vmem:[%s4177_s3 + $0x150] ss:$8 sps:$4 sm:$0xff]   ;;  %v3541_v42 = vld [vmem:[%s4177_s3 + $0x24] ss:$8 sps:$4 sm:$0xff]  }
  0xf4   :  { %1953 = vmatprep.subr.bf16.mxu1 %v3469_v43  ;;  %v3583_v43 = vld [vmem:[%s4177_s3 + $0x144] ss:$8 sps:$4 sm:$0xff]  }
  0xf6   :  { %1913 = vmatpush1.bf16.msra.mxu0 %v3464_v44  ;;  %v3539_v44 = vld [vmem:[%s4177_s3 + $0x20] ss:$8 sps:$4 sm:$0xff]  }
  0xf7   :  { %1954 = vmatpush1.bf16.msra.mxu1 %v3467_v45  ;;  %1914 = vmatprep.subr.bf16.mxu0 %v3472_v46  ;;  %v3581_v45 = vld [vmem:[%s4177_s3 + $0x140] ss:$8 sps:$4 sm:$0xff]   ;;  %v3544_v46 = vld [vmem:[%s4177_s3 + $0x14] ss:$8 sps:$4 sm:$0xff]  }
  0xf8   :  { %1955 = vmatprep.subr.bf16.mxu1 %v3475_v48  ;;  %v3586_v48 = vld [vmem:[%s4177_s3 + $0x134] ss:$8 sps:$4 sm:$0xff]  }
  0xfa   :  { %1915 = vmatpush1.bf16.msra.mxu0 %v3470_v49  ;;  %v3542_v49 = vld [vmem:[%s4177_s3 + $0x10] ss:$8 sps:$4 sm:$0xff]  }
  0xfb   :  { %1956 = vmatpush1.bf16.msra.mxu1 %v3473_v50  ;;  %1916 = vmatprep.subr.bf16.mxu0 %v3478_v52  ;;  %v3584_v50 = vld [vmem:[%s4177_s3 + $0x130] ss:$8 sps:$4 sm:$0xff]   ;;  %v3547_v52 = vld [vmem:[%s4177_s3 + $0x4] ss:$8 sps:$4 sm:$0xff]  }
  0xfc   :  { %1957 = vmatprep.subr.bf16.mxu1 %v3481_v53  ;;  %v3589_v53 = vld [vmem:[%s4177_s3 + $0x124] ss:$8 sps:$4 sm:$0xff]  }
  0xfe   :  { %1917 = vmatpush2.bf16.msra.mxu0 %v3476_v54  ;;  %v3545_v54 = vld [vmem:[%s4177_s3] ss:$8 sps:$4 sm:$0xff]  }
  0xff   :  { %1958 = vmatpush2.bf16.msra.mxu1 %v3479_v55  ;;  %1918 = vmatprep.subr.bf16.mxu0 %v3484_v56  ;;  %v3587_v55 = vld [vmem:[%s4177_s3 + $0x120] ss:$8 sps:$4 sm:$0xff]   ;;  %v3550_v56 = vld [vmem:[%s4177_s3 + $0xf4] ss:$8 sps:$4 sm:$0xff]  }
 0x100   :  { %1959 = vmatprep.subr.bf16.mxu1 %v3487_v57  ;;  %v3592_v57 = vld [vmem:[%s4177_s3 + $0x114] ss:$8 sps:$4 sm:$0xff]  }
 0x102   :  { %1919 = vmatpush2.bf16.msra.mxu0 %v3482_v58  ;;  %v3548_v58 = vld [vmem:[%s4177_s3 + $0xf0] ss:$8 sps:$4 sm:$0xff]  }
 0x103   :  { %1960 = vmatpush2.bf16.msra.mxu1 %v3485_v59  ;;  %1920 = vmatprep.subr.bf16.mxu0 %v3490_v60  ;;  %v3590_v59 = vld [vmem:[%s4177_s3 + $0x110] ss:$8 sps:$4 sm:$0xff]   ;;  %v3553_v60 = vld [vmem:[%s4177_s3 + $0xe4] ss:$8 sps:$4 sm:$0xff]  }
 0x104   :  { %1961 = vmatprep.subr.bf16.mxu1 %v3493_v61  ;;  %v3595_v61 = vld [vmem:[%s4177_s3 + $0x104] ss:$8 sps:$4 sm:$0xff]  }
 0x106   :  { %1921 = vmatpush2.bf16.msra.mxu0 %v3488_v62  ;;  %v3551_v62 = vld [vmem:[%s4177_s3 + $0xe0] ss:$8 sps:$4 sm:$0xff]  }
 0x107   :  { %1962 = vmatpush2.bf16.msra.mxu1 %v3491_v63  ;;  %1922 = vmatprep.subr.bf16.mxu0 %v3496_v0  ;;  %v3593_v63 = vld [vmem:[%s4177_s3 + $0x100] ss:$8 sps:$4 sm:$0xff]   ;;  %v3556_v0 = vld [vmem:[%s4177_s3 + $0xd4] ss:$8 sps:$4 sm:$0xff]  }
 0x108   :  { %1963 = vmatprep.subr.bf16.mxu1 %v3499_v1  ;;  %v3598_v1 = vld [vmem:[%s4177_s3 + $0x1f4] ss:$8 sps:$4 sm:$0xff]  }
 0x10a   :  { %1923 = vmatpush2.bf16.msra.mxu0 %v3494_v2  ;;  %v3554_v2 = vld [vmem:[%s4177_s3 + $0xd0] ss:$8 sps:$4 sm:$0xff]  }
 0x10b   :  { %1964 = vmatpush2.bf16.msra.mxu1 %v3497_v3  ;;  %1924 = vmatprep.subr.bf16.mxu0 %v3502_v4  ;;  %v3596_v3 = vld [vmem:[%s4177_s3 + $0x1f0] ss:$8 sps:$4 sm:$0xff]   ;;  %v3559_v4 = vld [vmem:[%s4177_s3 + $0xc4] ss:$8 sps:$4 sm:$0xff]  }
 0x10c   :  { %1965 = vmatprep.subr.bf16.mxu1 %v3505_v5  ;;  %v3601_v5 = vld [vmem:[%s4177_s3 + $0x1e4] ss:$8 sps:$4 sm:$0xff]  }
 0x10e   :  { %1925 = vmatpush2.bf16.msra.mxu0 %v3500_v8  ;;  %v3557_v8 = vld [vmem:[%s4177_s3 + $0xc0] ss:$8 sps:$4 sm:$0xff]  }
 0x10f   :  { %1966 = vmatpush2.bf16.msra.mxu1 %v3503_v9  ;;  %1926 = vmatprep.subr.bf16.mxu0 %v3508_v10  ;;  %v3599_v9 = vld [vmem:[%s4177_s3 + $0x1e0] ss:$8 sps:$4 sm:$0xff]   ;;  %v3562_v10 = vld [vmem:[%s4177_s3 + $0xb4] ss:$8 sps:$4 sm:$0xff]  }
 0x110   :  { %1967 = vmatprep.subr.bf16.mxu1 %v3511_v11  ;;  %v3604_v11 = vld [vmem:[%s4177_s3 + $0x1d4] ss:$8 sps:$4 sm:$0xff]  }
 0x112   :  { %1927 = vmatpush2.bf16.msra.mxu0 %v3506_v12  ;;  %v326_v12 = vlaneseq }
 0x113   :  { %1968 = vmatpush2.bf16.msra.mxu1 %v3509_v13  ;;  %1928 = vmatprep.subr.bf16.mxu0 %v3514_v14  ;;  %v3560_v13 = vld [vmem:[%s4177_s3 + $0xb0] ss:$8 sps:$4 sm:$0xff]  }
 0x114   :  { %1969 = vmatprep.subr.bf16.mxu1 %v3517_v15  ;;  %v3602_v14 = vld [vmem:[%s4177_s3 + $0x1d0] ss:$8 sps:$4 sm:$0xff]   ;;  %v3565_v15 = vld [vmem:[%s4177_s3 + $0xa4] ss:$8 sps:$4 sm:$0xff]  }
 0x116   :  { %1929 = vmatpush2.bf16.msra.mxu0 %v3512_v18  ;;  %v3607_v18 = vld [vmem:[%s4177_s3 + $0x1c4] ss:$8 sps:$4 sm:$0xff]  }
 0x117   :  { %1970 = vmatpush2.bf16.msra.mxu1 %v3515_v19  ;;  %1930 = vmatprep.subr.bf16.mxu0 %v3520_v20  ;;  %v3959_v19 = vshrl.u32 %v326_v12, 7  ;;  %v3563_v20 = vld [vmem:[%s4177_s3 + $0xa0] ss:$8 sps:$4 sm:$0xff]   ;;  %v2493_v12 = vld [vmem:[%s4179_s5 + $0x58] sm:$0xff] }
 0x118   :  { %1971 = vmatprep.subr.bf16.mxu1 %v3523_v21  ;;  %v3605_v21 = vld [vmem:[%s4177_s3 + $0x1c0] ss:$8 sps:$4 sm:$0xff]  }
 0x11a   :  { %1931 = vmatpush2.bf16.msra.mxu0 %v3518_v22  ;;  %v3568_v22 = vld [vmem:[%s4177_s3 + $0x94] ss:$8 sps:$4 sm:$0xff]  }
 0x11b   :  { %1972 = vmatpush2.bf16.msra.mxu1 %v3521_v23  ;;  %2394 = vmatprep.subr.bf16.mxu0 %v3526_v24  ;;  %v3610_v23 = vld [vmem:[%s4177_s3 + $0x1b4] ss:$8 sps:$4 sm:$0xff]   ;;  %v328_v24 = vsub.s32 0, %v3959_v19 }
 0x11c   :  { %2435 = vmatprep.subr.bf16.mxu1 %v3574_v51 }
 0x11d   :  { %v3808_v27 = vpop.f32.mrf.mxu0  ;;  %1933 = vmatmul.mubr.bf16.vlgmr.msra.gmra.mxu0 %v3785_v16  ;;  %v3530_v16 = vld [vmem:[%s4177_s3 + $0x50] ss:$8 sps:$4 sm:$0xff]  }
 0x11e   :  { %v3810_v28 = vpop.f32.mrf.mxu1  ;;  %1974 = vmatmul.mubr.bf16.vlgmr.msra.gmra.mxu1 %v3789_v17  ;;  %2395 = vmatpush1.bf16.msra.mxu0 %v3524_v25  ;;  %v3977_v25 = vld [vmem:[%s4176_s2] sm:$0xf] }
 0x11f   :  { %v3817_v30 = vpop.f32.mrf.mxu0  ;;  %2396 = vmatprep.subr.bf16.mxu0 %v3529_v26  ;;  %2436 = vmatpush1.bf16.msra.mxu1 %v3572_v7  ;;  %v332_v26 = vsub.s32 1, %v3959_v19 }
 0x120   :  { %v3819_v31 = vpop.f32.mrf.mxu1  ;;  %2437 = vmatprep.subr.bf16.mxu1 %v3577_v35 }
 0x121   :  { %v1692_v33 = vpop.f32.mrf.mxu0 }
 0x122   :  { %v1733_v34 = vpop.f32.mrf.mxu1  ;;  %2397 = vmatpush1.bf16.msra.mxu0 %v3527_v29  ;;  %v3566_v29 = vld [vmem:[%s4177_s3 + $0x90] ss:$8 sps:$4 sm:$0xff]   ;;  %v3571_v33 = vld [vmem:[%s4177_s3 + $0x84] ss:$8 sps:$4 sm:$0xff]  }
 0x123   :  { %v1693_v17 = vpop.f32.mrf.mxu0  ;;  %2398 = vmatprep.subr.bf16.mxu0 %v3532_v32  ;;  %2438 = vmatpush1.bf16.msra.mxu1 %v3575_v36  ;;  %v3608_v32 = vld [vmem:[%s4177_s3 + $0x1b0] ss:$8 sps:$4 sm:$0xff]   ;;  %v329_v34 = vrot.slane %v3977_v25, %v328_v24 }
 0x124   :  { %v1734_v47 = vpop.f32.mrf.mxu1  ;;  %2439 = vmatprep.subr.bf16.mxu1 %v3580_v39  ;;  %v3569_v17 = vld [vmem:[%s4177_s3 + $0x80] ss:$8 sps:$4 sm:$0xff]  }
 0x125   :  { %v1689_v47 = vadd.f32 %v3808_v27, %v329_v34  ;;  %v3611_v39 = vld [vmem:[%s4177_s3 + $0x1a0] ss:$8 sps:$4 sm:$0xff]  }
 0x126   :  { %2399 = vmatpush1.bf16.msra.mxu0 %v3530_v16  ;;  %v333_v16 = vrot.slane %v3977_v25, %v332_v26  ;;  %v2487_v34 = vld [vmem:[%s4179_s5 + $0x28] sm:$0xff] }
 0x127   :  { %2400 = vmatprep.subr.bf16.mxu0 %v3535_v6  ;;  %2440 = vmatpush1.bf16.msra.mxu1 %v3578_v41  ;;  %v1730_v7 = vadd.f32 %v3810_v28, %v1689_v47 }
 0x128   :  { %2441 = vmatprep.subr.bf16.mxu1 %v3583_v43  ;;  %v1691_v6 = vadd.f32 %v3817_v30, %v333_v16  ;;  %v3616_v43 = vld [vmem:[%s4177_s3 + $0x194] ss:$8 sps:$4 sm:$0xff]   ;;  %v336_v16 = vsub.s32 2, %v3959_v19 }
 0x12a   :  { %2401 = vmatpush1.bf16.msra.mxu0 %v3533_v38  ;;  %v3613_v38 = vld [vmem:[%s4177_s3 + $0x1a4] ss:$8 sps:$4 sm:$0xff]   ;;  %v1732_v36 = vadd.f32 %v3819_v31, %v1691_v6  ;;  %v3614_v31 = vld [vmem:[%s4177_s3 + $0x190] ss:$8 sps:$4 sm:$0xff]   ;;  %v337_v47 = vrot.slane %v3977_v25, %v336_v16 }
 0x12b   :  { %2402 = vmatprep.subr.bf16.mxu0 %v3538_v37  ;;  %2442 = vmatpush1.bf16.msra.mxu1 %v3581_v45 }
 0x12c   :  { %2443 = vmatprep.subr.bf16.mxu1 %v3586_v48 }
 0x12e   :  { %2403 = vmatpush1.bf16.msra.mxu0 %v3536_v40 }
 0x12f   :  { %2404 = vmatprep.subr.bf16.mxu0 %v3541_v42  ;;  %2444 = vmatpush1.bf16.msra.mxu1 %v3584_v50 }
 0x130   :  { %2445 = vmatprep.subr.bf16.mxu1 %v3589_v53 }
 0x132   :  { %2405 = vmatpush1.bf16.msra.mxu0 %v3539_v44 }
 0x133   :  { %2406 = vmatprep.subr.bf16.mxu0 %v3544_v46  ;;  %2446 = vmatpush1.bf16.msra.mxu1 %v3587_v55 }
 0x134   :  { %2447 = vmatprep.subr.bf16.mxu1 %v3592_v57 }
 0x136   :  { %2407 = vmatpush1.bf16.msra.mxu0 %v3542_v49 }
 0x137   :  { %2408 = vmatprep.subr.bf16.mxu0 %v3547_v52  ;;  %2448 = vmatpush1.bf16.msra.mxu1 %v3590_v59  ;;  %v3619_v52 = vld [vmem:[%s4177_s3 + $0x184] ss:$8 sps:$4 sm:$0xff]  }
 0x138   :  { %2449 = vmatprep.subr.bf16.mxu1 %v3595_v61 }
 0x13a   :  { %2409 = vmatpush1.bf16.msra.mxu0 %v3545_v54  ;;  %v3617_v54 = vld [vmem:[%s4177_s3 + $0x180] ss:$8 sps:$4 sm:$0xff]  }
 0x13b   :  { %2410 = vmatprep.subr.bf16.mxu0 %v3550_v56  ;;  %2450 = vmatpush1.bf16.msra.mxu1 %v3593_v63 }
 0x13c   :  { %2451 = vmatprep.subr.bf16.mxu1 %v3598_v1  ;;  %v2513_v1 = vld [vmem:[%s4179_s5 + $0xf8] sm:$0xff] }
 0x13e   :  { %2411 = vmatpush2.bf16.msra.mxu0 %v3548_v58 }
 0x13f   :  { %2412 = vmatprep.subr.bf16.mxu0 %v3553_v60  ;;  %2452 = vmatpush2.bf16.msra.mxu1 %v3596_v3  ;;  %v2512_v3 = vld [vmem:[%s4179_s5 + $0xf0] sm:$0xff] }
 0x140   :  { %2453 = vmatprep.subr.bf16.mxu1 %v3601_v5  ;;  %v2511_v5 = vld [vmem:[%s4179_s5 + $0xe8] sm:$0xff] }
 0x142   :  { %2413 = vmatpush2.bf16.msra.mxu0 %v3551_v62 }
 0x143   :  { %2414 = vmatprep.subr.bf16.mxu0 %v3556_v0  ;;  %2454 = vmatpush2.bf16.msra.mxu1 %v3599_v9  ;;  %v2510_v9 = vld [vmem:[%s4179_s5 + $0xe0] sm:$0xff] }
 0x144   :  { %2455 = vmatprep.subr.bf16.mxu1 %v3604_v11  ;;  %v2509_v11 = vld [vmem:[%s4179_s5 + $0xd8] sm:$0xff] }
 0x146   :  { %2415 = vmatpush2.bf16.msra.mxu0 %v3554_v2  ;;  %v2497_v2 = vld [vmem:[%s4179_s5 + $0x78] sm:$0xff] }
 0x147   :  { %2416 = vmatprep.subr.bf16.mxu0 %v3559_v4  ;;  %2456 = vmatpush2.bf16.msra.mxu1 %v3602_v14  ;;  %v2496_v4 = vld [vmem:[%s4179_s5 + $0x70] sm:$0xff] }
 0x148   :  { %2457 = vmatprep.subr.bf16.mxu1 %v3607_v18  ;;  %v2492_v14 = vld [vmem:[%s4179_s5 + $0x50] sm:$0xff]  ;;  %v2491_v18 = vld [vmem:[%s4179_s5 + $0x48] sm:$0xff] }
 0x14a   :  { %2417 = vmatpush2.bf16.msra.mxu0 %v3557_v8  ;;  %v2495_v8 = vld [vmem:[%s4179_s5 + $0x68] sm:$0xff] }
 0x14b   :  { %2418 = vmatprep.subr.bf16.mxu0 %v3562_v10  ;;  %2458 = vmatpush2.bf16.msra.mxu1 %v3605_v21  ;;  %v2494_v10 = vld [vmem:[%s4179_s5 + $0x60] sm:$0xff] }
 0x14c   :  { %2459 = vmatprep.subr.bf16.mxu1 %v3610_v23  ;;  %v2490_v21 = vld [vmem:[%s4179_s5 + $0x40] sm:$0xff]  ;;  %v2489_v23 = vld [vmem:[%s4179_s5 + $0x38] sm:$0xff] }
 0x14e   :  { %2419 = vmatpush2.bf16.msra.mxu0 %v3560_v13  ;;  %v2508_v13 = vld [vmem:[%s4179_s5 + $0xd0] sm:$0xff] }
 0x14f   :  { %2420 = vmatprep.subr.bf16.mxu0 %v3565_v15  ;;  %2460 = vmatpush2.bf16.msra.mxu1 %v3608_v32  ;;  %v2507_v15 = vld [vmem:[%s4179_s5 + $0xc8] sm:$0xff]  ;;  %v2488_v32 = vld [vmem:[%s4179_s5 + $0x30] sm:$0xff] }
 0x150   :  { %2461 = vmatprep.subr.bf16.mxu1 %v3613_v38 }
 0x152   :  { %2421 = vmatpush2.bf16.msra.mxu0 %v3563_v20  ;;  %v2506_v20 = vld [vmem:[%s4179_s5 + $0xc0] sm:$0xff] }
 0x153   :  { %2422 = vmatprep.subr.bf16.mxu0 %v3568_v22  ;;  %2462 = vmatpush2.bf16.msra.mxu1 %v3611_v39  ;;  %v2505_v22 = vld [vmem:[%s4179_s5 + $0xb8] sm:$0xff] }
 0x154   :  { %2463 = vmatprep.subr.bf16.mxu1 %v3616_v43 }
 0x156   :  { %2423 = vmatpush2.bf16.msra.mxu0 %v3566_v29  ;;  %v2504_v29 = vld [vmem:[%s4179_s5 + $0xb0] sm:$0xff] }
 0x157   :  { %2424 = vmatprep.subr.bf16.mxu0 %v3571_v33  ;;  %2464 = vmatpush2.bf16.msra.mxu1 %v3614_v31  ;;  %v2503_v33 = vld [vmem:[%s4179_s5 + $0xa8] sm:$0xff] }
 0x158   :  { %2465 = vmatprep.subr.bf16.mxu1 %v3619_v52  ;;  %v2502_v52 = vld [vmem:[%s4179_s5 + $0xa0] sm:$0xff] }
 0x15a   :  { %2425 = vmatpush2.bf16.msra.mxu0 %v3569_v17  ;;  %v340_v17 = vsub.s32 3, %v3959_v19  ;;  %v2599_v19 = vld [vmem:[#allocation4 + $0x28] sm:$0xff] }
 0x15b   :  { %2466 = vmatpush2.bf16.msra.mxu1 %v3617_v54  ;;  %3037 = vmatprep.subr.mxu0 %v2513_v1  ;;  %v2486_v54 = vld [vmem:[%s4179_s5 + $0x20] sm:$0xff] }
 0x15c   :  { %v341_v6 = vrot.slane %v3977_v25, %v340_v17  ;;  %v2482_v1 = vld [vmem:[%s4179_s5] sm:$0xff] }
 0x15d   :  { %v1770_v51 = vpop.f32.mrf.mxu0 }
 0x15e   :  { %v1811_v35 = vpop.f32.mrf.mxu1  ;;  %v1771_v37 = vadd.f32 %v1770_v51, %v1730_v7 }
 0x15f   :  { %v1772_v40 = vpop.f32.mrf.mxu0 }
 0x160   :  { %v1813_v27 = vpop.f32.mrf.mxu1  ;;  %v1812_v30 = vadd.f32 %v1811_v35, %v1771_v37  ;;  %v1773_v41 = vadd.f32 %v1772_v40, %v1732_v36 }
 0x161   :  { %v1774_v28 = vpop.f32.mrf.mxu0 }
 0x162   :  { %v1815_v42 = vpop.f32.mrf.mxu1  ;;  %v1982_v44 = vmul.f32 0.2, %v1812_v30  ;;  %v1814_v45 = vadd.f32 %v1813_v27, %v1773_v41 }
 0x163   :  { %v1775_v46 = vpop.f32.mrf.mxu0 }
 0x164   :  { %v1816_v48 = vpop.f32.mrf.mxu1  ;;  %v1986_v49 = vmax.f32 %v1812_v30, %v1982_v44  ;;  %v1983_v50 = vmul.f32 0.2, %v1814_v45 }
 0x166   :  { %1990 = vst [vmem:[%s4183_s9] sm:$0xff] %v1986_v49  ;;  %v1987_v53 = vmax.f32 %v1814_v45, %v1983_v50  ;;  %v1994_v56 = vpack.c.bf16 %v1986_v49, %v1986_v49 }
 0x168   :  { %1991 = vst [vmem:[%s4183_s9 + $0x8] sm:$0xff] %v1987_v53  ;;  %v1995_v55 = vpack.c.bf16 %v1987_v53, %v1987_v53 }
 0x16a   :  { %2426 = vmatprep.mubr.bf16.mxu0 %v1995_v55  ;;  %v2501_v55 = vld [vmem:[%s4179_s5 + $0x98] sm:$0xff] }
 0x16b   :  { %2427 = vmatmul.mubr.bf16.vlgmr.msra.gmra.mxu0 %v1994_v56 }
 0x16c   :  { %3038 = vmatpush3.msra.mxu0 %v2497_v2  ;;  %v2609_v2 = vld [vmem:[#allocation4 + $0x78] sm:$0xff] }
 0x16d   :  { %3039 = vmatprep.subr.mxu0 %v2512_v3  ;;  %v3672_v3 = vmov 0.0  }
 0x16e   :  { %3040 = vmatpush3.msra.mxu0 %v2496_v4  ;;  %3089 = vmatprep.subr.mxu1 %v3672_v3  ;;  %v2608_v4 = vld [vmem:[#allocation4 + $0x70] sm:$0xff] }
 0x16f   :  { %3041 = vmatprep.subr.mxu0 %v2511_v5  ;;  %v2607_v5 = vld [vmem:[#allocation4 + $0x68] sm:$0xff] }
 0x170   :  { %3042 = vmatpush3.msra.mxu0 %v2495_v8  ;;  %v2606_v8 = vld [vmem:[#allocation4 + $0x60] sm:$0xff] }
 0x171   :  { %3043 = vmatprep.subr.mxu0 %v2510_v9  ;;  %v2605_v9 = vld [vmem:[#allocation4 + $0x58] sm:$0xff] }
 0x172   :  { %3044 = vmatpush3.msra.mxu0 %v2494_v10  ;;  %v2604_v10 = vld [vmem:[#allocation4 + $0x50] sm:$0xff] }
 0x173   :  { %3045 = vmatprep.subr.mxu0 %v2509_v11  ;;  %v2603_v11 = vld [vmem:[#allocation4 + $0x48] sm:$0xff] }
 0x174   :  { %3046 = vmatpush3.msra.mxu0 %v2493_v12  ;;  %v2602_v12 = vld [vmem:[#allocation4 + $0x40] sm:$0xff] }
 0x175   :  { %3047 = vmatprep.subr.mxu0 %v2508_v13  ;;  %v2601_v13 = vld [vmem:[#allocation4 + $0x38] sm:$0xff] }
 0x176   :  { %3048 = vmatpush3.msra.mxu0 %v2492_v14  ;;  %v2600_v14 = vld [vmem:[#allocation4 + $0x30] sm:$0xff] }
 0x177   :  { %3049 = vmatprep.subr.mxu0 %v2507_v15  ;;  %v2062_v15 = vld [vmem:[%s4178_s4] sm:$0x3] }
 0x178   :  { %3050 = vmatpush3.msra.mxu0 %v2491_v18  ;;  %v2067_v18 = vrot.slane %v2062_v15, %v328_v24  ;;  %v2598_v24 = vld [vmem:[#allocation4 + $0x20] sm:$0xff] }
 0x179   :  { %3051 = vmatprep.subr.mxu0 %v2506_v20  ;;  %v2071_v20 = vrot.slane %v2062_v15, %v332_v26  ;;  %v2597_v26 = vld [vmem:[#allocation4 + $0x18] sm:$0xff] }
 0x17a   :  { %3052 = vmatpush3.msra.mxu0 %v2490_v21 }
 0x17b   :  { %3053 = vmatprep.subr.mxu0 %v2505_v22 }
 0x17c   :  { %3054 = vmatpush3.msra.mxu0 %v2489_v23 }
 0x17d   :  { %3055 = vmatprep.subr.mxu0 %v2504_v29 }
 0x17e   :  { %3056 = vmatpush3.msra.mxu0 %v2488_v32 }
 0x17f   :  { %3057 = vmatprep.subr.mxu0 %v2503_v33 }
 0x180   :  { %3058 = vmatpush3.msra.mxu0 %v2487_v34 }
 0x181   :  { %3059 = vmatprep.subr.mxu0 %v2502_v52 }
 0x182   :  { %3060 = vmatpush3.msra.mxu0 %v2486_v54 }
 0x183   :  { %3061 = vmatprep.subr.mxu0 %v2501_v55 }
 0x19d   :  { %v1852_v57 = vpop.f32.mrf.mxu0 }
 0x19e   :  { %v1893_v58 = vpop.f32.mrf.mxu1  ;;  %v1853_v7 = vadd.f32 %v1852_v57, %v337_v47  ;;  %v2485_v57 = vld [vmem:[%s4179_s5 + $0x18] sm:$0xff] }
 0x19f   :  { %v1854_v59 = vpop.f32.mrf.mxu0  ;;  %3062 = vmatpush3.msra.mxu0 %v2485_v57 }
 0x1a0   :  { %v1895_v60 = vpop.f32.mrf.mxu1  ;;  %v1855_v51 = vadd.f32 %v1854_v59, %v341_v6  ;;  %v1894_v35 = vadd.f32 %v1893_v58, %v1853_v7  ;;  %v2500_v58 = vld [vmem:[%s4179_s5 + $0x90] sm:$0xff] }
 0x1a1   :  { %v1856_v61 = vpop.f32.mrf.mxu0  ;;  %3063 = vmatprep.subr.mxu0 %v2500_v58 }
 0x1a2   :  { %v1897_v62 = vpop.f32.mrf.mxu1  ;;  %v1896_v37 = vadd.f32 %v1895_v60, %v1855_v51  ;;  %v2484_v60 = vld [vmem:[%s4179_s5 + $0x10] sm:$0xff]  ;;  %v2499_v61 = vld [vmem:[%s4179_s5 + $0x88] sm:$0xff] }
 0x1a3   :  { %v1857_v63 = vpop.f32.mrf.mxu0  ;;  %3064 = vmatpush3.msra.mxu0 %v2484_v60  ;;  %v2596_v51 = vld [vmem:[#allocation4 + $0x10] sm:$0xff] }
 0x1a4   :  { %v1898_v0 = vpop.f32.mrf.mxu1  ;;  %3065 = vmatprep.subr.mxu0 %v2499_v61  ;;  %v2483_v63 = vld [vmem:[%s4179_s5 + $0x8] sm:$0xff] }
 0x1a5   :  { %3066 = vmatpush3.msra.mxu0 %v2483_v63  ;;  %v2498_v0 = vld [vmem:[%s4179_s5 + $0x80] sm:$0xff] }
 0x1a6   :  { %3067 = vmatprep.subr.mxu0 %v2498_v0 }
 0x1a7   :  { %3068 = vmatpush3.msra.mxu0 %v2482_v1 }
 0x1dd   :  { %v1934_v38 = vpop.f32.mrf.mxu0 }
 0x1de   :  { %v1975_v36 = vpop.f32.mrf.mxu1  ;;  %v1935_v39 = vadd.f32 %v1934_v38, %v1894_v35  ;;  %v2595_v35 = vld [vmem:[#allocation4 + $0x8] sm:$0xff]  ;;  %v2594_v38 = vld [vmem:[#allocation4] sm:$0xff] }
 0x1df   :  { %v1936_v40 = vpop.f32.mrf.mxu0 }
 0x1e0   :  { %v1977_v27 = vpop.f32.mrf.mxu1  ;;  %v1976_v30 = vadd.f32 %v1975_v36, %v1935_v39  ;;  %v1937_v41 = vadd.f32 %v1936_v40, %v1896_v37  ;;  %v3035_v37 = vld [vmem:[%s4180_s6] ss:$0 sm:$0xff] }
 0x1e1   :  { %v1938_v28 = vpop.f32.mrf.mxu0 }
 0x1e2   :  { %v1979_v42 = vpop.f32.mrf.mxu1  ;;  %v1984_v43 = vmul.f32 0.2, %v1976_v30  ;;  %v1978_v44 = vadd.f32 %v1977_v27, %v1937_v41  ;;  %v3036_v28 = vld [vmem:[%s4182_s8] ss:$0 sm:$0xff] }
 0x1e3   :  { %v1939_v45 = vpop.f32.mrf.mxu0 }
 0x1e4   :  { %v1980_v31 = vpop.f32.mrf.mxu1  ;;  %v1988_v46 = vmax.f32 %v1976_v30, %v1984_v43  ;;  %v1985_v48 = vmul.f32 0.2, %v1978_v44 }
 0x1e6   :  { %1992 = vst [vmem:[%s4183_s9 + $0x10] sm:$0xff] %v1988_v46  ;;  %v1989_v25 = vmax.f32 %v1978_v44, %v1985_v48  ;;  %v1996_v50 = vpack.c.bf16 %v1988_v46, %v1988_v46 }
 0x1e8   :  { %1993 = vst [vmem:[%s4183_s9 + $0x18] sm:$0xff] %v1989_v25  ;;  %v1997_v49 = vpack.c.bf16 %v1989_v25, %v1989_v25 }
 0x1ea   :  { %2467 = vmatprep.mubr.bf16.mxu1 %v1997_v49 }
 0x1eb   :  { %2468 = vmatmul.mubr.bf16.vlgmr.msra.gmra.mxu1 %v1996_v50 }
 0x1ec   :  { %3090 = vmatpush3.msra.mxu1 %v2609_v2  ;;  %3121 = vmatprep.mubr.msk.f32.mxu1 %vm3673_vm0, %v3672_v3 }
 0x1ed   :  { %3091 = vmatprep.subr.mxu1 %v3672_v3 }
 0x1ee   :  { %3092 = vmatpush3.msra.mxu1 %v2608_v4 }
 0x1ef   :  { %3093 = vmatprep.subr.mxu1 %v3672_v3 }
 0x1f0   :  { %3094 = vmatpush3.msra.mxu1 %v2607_v5 }
 0x1f1   :  { %3095 = vmatprep.subr.mxu1 %v3672_v3 }
 0x1f2   :  { %3096 = vmatpush3.msra.mxu1 %v2606_v8 }
 0x1f3   :  { %3097 = vmatprep.subr.mxu1 %v3672_v3 }
 0x1f4   :  { %3098 = vmatpush3.msra.mxu1 %v2605_v9 }
 0x1f5   :  { %3099 = vmatprep.subr.mxu1 %v3672_v3 }
 0x1f6   :  { %3100 = vmatpush3.msra.mxu1 %v2604_v10 }
 0x1f7   :  { %3101 = vmatprep.subr.mxu1 %v3672_v3 }
 0x1f8   :  { %3102 = vmatpush3.msra.mxu1 %v2603_v11 }
 0x1f9   :  { %3103 = vmatprep.subr.mxu1 %v3672_v3 }
 0x1fa   :  { %3104 = vmatpush3.msra.mxu1 %v2602_v12 }
 0x1fb   :  { %3105 = vmatprep.subr.mxu1 %v3672_v3 }
 0x1fc   :  { %3106 = vmatpush3.msra.mxu1 %v2601_v13 }
 0x1fd   :  { %3107 = vmatprep.subr.mxu1 %v3672_v3 }
 0x1fe   :  { %3108 = vmatpush3.msra.mxu1 %v2600_v14 }
 0x1ff   :  { %3109 = vmatprep.subr.mxu1 %v3672_v3 }
 0x200   :  { %3110 = vmatpush3.msra.mxu1 %v2599_v19 }
 0x201   :  { %3111 = vmatprep.subr.mxu1 %v3672_v3 }
 0x202   :  { %3112 = vmatpush3.msra.mxu1 %v2598_v24 }
 0x203   :  { %3113 = vmatprep.subr.mxu1 %v3672_v3 }
 0x204   :  { %3114 = vmatpush3.msra.mxu1 %v2597_v26 }
 0x205   :  { %3115 = vmatprep.subr.mxu1 %v3672_v3 }
 0x206   :  { %3116 = vmatpush3.msra.mxu1 %v2596_v51 }
 0x207   :  { %3117 = vmatprep.subr.mxu1 %v3672_v3 }
 0x208   :  { %3118 = vmatpush3.msra.mxu1 %v2595_v35 }
 0x209   :  { %3119 = vmatprep.subr.mxu1 %v3672_v3 }
 0x20a   :  { %3120 = vmatpush3.msra.mxu1 %v2594_v38 }
 0x22b   :  { %v2428_v53 = vpop.f32.mrf.mxu0 }
 0x22c   :  { %v2429_v21 = vadd.f32 %v2428_v53, %v2067_v18 }
 0x22d   :  { %v2430_v56 = vpop.f32.mrf.mxu0 }
 0x22e   :  { %v2431_v23 = vadd.f32 %v2430_v56, %v2071_v20 }
 0x22f   :  { %v2432_v59 = vpop.f32.mrf.mxu0 }
 0x231   :  { %v2433_v62 = vpop.f32.mrf.mxu0 }
 0x2ab   :  { %v2469_v22 = vpop.f32.mrf.mxu1 }
 0x2ac   :  { %v2470_v29 = vadd.f32 %v2469_v22, %v2429_v21 }
 0x2ad   :  { %v2471_v32 = vpop.f32.mrf.mxu1 }
 0x2ae   :  { %v2476_v33 = vmul.f32 0.2, %v2470_v29  ;;  %v2472_v34 = vadd.f32 %v2471_v32, %v2431_v23 }
 0x2af   :  { %v2473_v16 = vpop.f32.mrf.mxu1 }
 0x2b0   :  { %v2478_v17 = vmax.f32 %v2470_v29, %v2476_v33  ;;  %v2477_v47 = vmul.f32 0.2, %v2472_v34 }
 0x2b1   :  { %v2474_v6 = vpop.f32.mrf.mxu1 }
 0x2b2   :  { %2480 = vst [vmem:[%s4184_s10] sm:$0xff] %v2478_v17  ;;  %v2479_v7 = vmax.f32 %v2472_v34, %v2477_v47 }
 0x2b4   :  { %2481 = vst [vmem:[%s4184_s10 + $0x8] sm:$0xff] %v2479_v7  ;;  %2585 = vmatprep.mubr.f32.mxu0 %v2479_v7 }
 0x2b5   :  { %2586 = vmatmul.mubr.f32.vlgmr.msra.gmra.mxu0 %v2478_v17 }
 0x375   :  { %v3069_v36 = vpop.f32.mrf.mxu0 }
 0x377   :  { %v3070_v39 = vpop.f32.mrf.mxu0 }
 0x378   :  { %v3071_v40 = vadd.f32 %v3070_v39, %v3069_v36 }
 0x37a   :  { %v2588_v27 = vadd.f32 %v3071_v40, %v3035_v37 }
 0x37c   :  { %v2591_v30 = vmul.f32 0.2, %v2588_v27 }
 0x37e   :  { %v2592_v41 = vmax.f32 %v2588_v27, %v2591_v30 }
 0x380   :  { %2593 = vst [vmem:[%s4185_s11] sm:$0xff] %v2592_v41  ;;  %3122 = vmatmul.mubr.f32.vlgmr.msra.gmra.mxu1 %v2592_v41 }
 0x440   :  { %v2683_v42 = vpop.f32.mrf.mxu1 }
 0x441   :  { %v2684_v43 = vadd.f32 %v3036_v28, %v2683_v42 }
 0x442   :  { %v3123_v44 = vpop.f32.mrf.mxu1 }
 0x443   :  { %3620 = vtanh.f32 %v2684_v43 }
 0x450   :  { %v3621_v45 = vpop.eup %3620 }
 0x451   :  { %2688 = vst [vmem:[%s4186_s12] sm:$0xff] %v3621_v45 }
 0x452   :  { %2705 = vsyncpa [#allocation3], 1 }
 0x453   :  { %2706 = vsyncpa [#allocation5], 1 }

</bundles_post_ra>
